<compile_context>
chip_gen: v7x
topology: tpu7x:2x2x1
jax: 0.10.0
libtpu: 0.0.40
codegen_flags: <defaults>
</compile_context>

<pallas_src>
import jax
import jax.numpy as jnp
from jax import lax
from jax.experimental import pallas as pl
from jax.experimental.pallas import tpu as pltpu

IN_FEATURES = 784
OUT_FEATURES = 10


def netv1_kernel(x_ref, w_ref, o_ref):
    # h = x @ W on the MXU, f32 accumulation, full-precision passes.
    h = jnp.dot(
        x_ref[...],
        w_ref[...],
        preferred_element_type=jnp.float32,
        precision=lax.Precision.HIGHEST,
    )
    # h = exp(h)  (EUP)
    h = jnp.exp(h)
    # Row-sum over the 10 live columns (XLU) and normalize (exact reciprocal).
    z = jnp.sum(h, axis=1, keepdims=True)
    o_ref[...] = (h * pl.reciprocal(z, approx=False)).astype(o_ref.dtype)


def _pick_tiling(n):
    """Generation-dependent batch tile and scoped-VMEM limit.

    Working sets (f32, double-buffered x + out, resident W):
      TN=8192: ~49 MiB (x) + ~8 MiB (out, lane-padded in VMEM) + ~0.4 MiB (W)
               -> needs ~80 MiB scoped VMEM; fine on 128-MiB parts (v5e/v6e).
      TN=4096: ~26 MiB + ~4 MiB + ~0.4 MiB -> fits a 48 MiB limit on v7x
               (64 MiB physical VMEM).
    """
    block_n = 4096
    vmem_limit = 48 * 1024 * 1024
    try:
        info = pltpu.get_tpu_info()
        if info.vmem_capacity_bytes >= 96 * 1024 * 1024:  # v5e / v6e class
            block_n = 8192
            vmem_limit = 80 * 1024 * 1024
    except Exception:
        pass  # conservative defaults above work on every generation

    tn = min(block_n, n)
    if tn != n:
        # Satisfy the (8, 128) block constraint on the sublane dim.
        tn = max(8, (tn // 8) * 8)
    return tn, vmem_limit


def netv1_forward(x, w):
    n, k = x.shape
    k2, m = w.shape
    assert k == k2 == IN_FEATURES and m == OUT_FEATURES

    tn, vmem_limit = _pick_tiling(n)
    grid = (pl.cdiv(n, tn),)

    return pl.pallas_call(
        netv1_kernel,
        out_shape=jax.ShapeDtypeStruct((n, m), jnp.float32),
        grid_spec=pltpu.PrefetchScalarGridSpec(
            num_scalar_prefetch=0,
            grid=grid,
            in_specs=[
                # x streamed tile-by-tile (double-buffered by Pallas).
                pl.BlockSpec((tn, k), lambda i: (i, 0)),
                # W: constant index_map -> loaded once, VMEM-resident.
                pl.BlockSpec((k, m), lambda i: (0, 0)),
            ],
            # (tn, 10) output block: last dim equals the full array dim.
            out_specs=pl.BlockSpec((tn, m), lambda i: (i, 0)),
        ),
        compiler_params=pltpu.CompilerParams(
            dimension_semantics=("parallel",),
            vmem_limit_bytes=vmem_limit,
        ),
    )(x, w)


def reference(x, w):
    h = jnp.exp(jnp.dot(x, w, precision=lax.Precision.HIGHEST))
    return h / jnp.sum(h, axis=1, keepdims=True)


if __name__ == "__main__":
    key = jax.random.PRNGKey(0)
    kx, kw = jax.random.split(key)

    batch = 8
    # Pixel-intensity-like inputs (keeps exp() well inside the f32 range,
    # matching Netv1's intended MNIST-style usage).
    x = jax.random.uniform(kx, (batch, IN_FEATURES), dtype=jnp.float32)
    # Mirrors nn.Parameter(torch.randn(784, 10)).
    w = jax.random.normal(kw, (IN_FEATURES, OUT_FEATURES), dtype=jnp.float32)

    out = netv1_forward(x, w)
    out = jax.block_until_ready(out)

    ref = reference(x, w)
    assert out.shape == (batch, OUT_FEATURES)
    assert jnp.allclose(out, ref, atol=1e-6, rtol=1e-4), "mismatch vs reference"

    print("KERNEL_OK")
</pallas_src>

<mosaic_0001>
module attributes {stable_mosaic.version = 11 : i64} {
  func.func @netv1_kernel(%arg0: i32, %arg1: memref<8x784xf32, #tpu.memory_space<vmem>>, %arg2: memref<784x10xf32, #tpu.memory_space<vmem>>, %arg3: memref<8x10xf32, #tpu.memory_space<vmem>>) attributes {dimension_semantics = [#tpu.dimension_semantics<parallel>], iteration_bounds = array<i64: 1>, scalar_prefetch = 0 : i64, scratch_operands = 0 : i64, tpu.core_type = #tpu.core_type<tc>, window_params = [{transform_indices = @transform_0, window_bounds = array<i64: 8, 784>}, {pipeline_mode = #tpu.pipeline_mode<synchronous>, transform_indices = @transform_1, window_bounds = array<i64: 784, 10>}, {transform_indices = @transform_2, window_bounds = array<i64: 8, 10>}]} {
    %c0 = arith.constant 0 : index
    %c0_0 = arith.constant 0 : index
    %0 = vector.load %arg1[%c0, %c0_0] : memref<8x784xf32, #tpu.memory_space<vmem>>, vector<8x784xf32>
    %c0_1 = arith.constant 0 : index
    %c0_2 = arith.constant 0 : index
    %1 = vector.load %arg2[%c0_1, %c0_2] : memref<784x10xf32, #tpu.memory_space<vmem>>, vector<784x10xf32>
    %cst = arith.constant dense<0.000000e+00> : vector<8x10xf32>
    %2 = tpu.matmul %0, %1, %cst {dimension_numbers = #tpu.dot_dimension_numbers<[1], [0], [0], [1], [0, 0, 1, 1], [], []>, precision = #tpu.contract_precision<fp32>} : vector<8x784xf32>, vector<784x10xf32>, vector<8x10xf32> -> vector<8x10xf32>
    %3 = math.exp %2 : vector<8x10xf32>
    %cst_3 = arith.constant dense<0.000000e+00> : vector<8xf32>
    %4 = vector.multi_reduction <add>, %3, %cst_3 [1] : vector<8x10xf32> to vector<8xf32>
    %5 = vector.shape_cast %4 : vector<8xf32> to vector<8x1xf32>
    %6 = tpu.reciprocal %5 : vector<8x1xf32> -> vector<8x1xf32>
    %7 = vector.broadcast %6 : vector<8x1xf32> to vector<8x10xf32>
    %8 = arith.mulf %3, %7 : vector<8x10xf32>
    %c0_4 = arith.constant 0 : index
    %c0_5 = arith.constant 0 : index
    %9 = vector.load %arg3[%c0_4, %c0_5] : memref<8x10xf32, #tpu.memory_space<vmem>>, vector<8x10xf32>
    tpu.vector_store %arg3[%c0_4, %c0_5], %8 {strides = array<i32>} : memref<8x10xf32, #tpu.memory_space<vmem>>, vector<8x10xf32>,
    return
  }
  func.func @transform_0(%arg0: i32) -> (i32, i32) {
    %c0_i32 = arith.constant 0 : i32
    %c0_i32_0 = arith.constant 0 : i32
    return %arg0, %c0_i32 : i32, i32
  }
  func.func @transform_1(%arg0: i32) -> (i32, i32) {
    %c0_i32 = arith.constant 0 : i32
    %c0_i32_0 = arith.constant 0 : i32
    %c0_i32_1 = arith.constant 0 : i32
    return %c0_i32, %c0_i32_0 : i32, i32
  }
  func.func @transform_2(%arg0: i32) -> (i32, i32) {
    %c0_i32 = arith.constant 0 : i32
    %c0_i32_0 = arith.constant 0 : i32
    return %arg0, %c0_i32 : i32, i32
  }
}

</mosaic_0001>

<bundles_post_ra>
// kernel: tpu_custom_call.1
= control target key start
LH: loop header
LB: loop body
LE: loop exit
PB: predicated region body
PF: predicated region fallthrough
CT: control target
= control target key end

     0   :  { %s6191_s0 = inlined_call_operand.vmem [shape: f32[8,784], index: 0, kind: input, shape index: {}]   ;;  %s6192_s1 = inlined_call_operand.vmem [shape: f32[784,10], index: 1, kind: input, shape index: {}]   ;;  %s6193_s2 = inlined_call_operand.hbm [shape: f32[8,10], index: 2, kind: output, shape index: {}]  }
   0x1   :  { %v35_v0 = vld [vmem:[%s6192_s1 + $0x80] sm:$0xff]  ;;  %v36_v1 = vld [vmem:[%s6192_s1 + $0x88] sm:$0xff]  ;;  %v37_v7 = vld [vmem:[%s6192_s1 + $0x90] sm:$0xff] }
   0x2   :  { %v19_v2 = vld [vmem:[%s6192_s1] sm:$0xff]  ;;  %v170_v3 = vand.u32 4294901760, %v35_v0  ;;  %v173_v4 = vand.u32 4294901760, %v36_v1  ;;  %v20_v5 = vld [vmem:[%s6192_s1 + $0x8] sm:$0xff]  ;;  %v38_v8 = vld [vmem:[%s6192_s1 + $0x98] sm:$0xff]  ;;  %v176_v10 = vand.u32 4294901760, %v37_v7 }
   0x3   :  { %v122_v6 = vand.u32 4294901760, %v19_v2  ;;  %v125_v9 = vand.u32 4294901760, %v20_v5  ;;  %v179_v11 = vand.u32 4294901760, %v38_v8  ;;  %v21_v12 = vld [vmem:[%s6192_s1 + $0x10] sm:$0xff]  ;;  %v22_v13 = vld [vmem:[%s6192_s1 + $0x18] sm:$0xff]  ;;  %v39_v18 = vld [vmem:[%s6192_s1 + $0xa0] sm:$0xff] }
   0x4   :  { %v4558_v14 = vpack.c.bf16 %v173_v4, %v170_v3  ;;  %v128_v16 = vand.u32 4294901760, %v21_v12  ;;  %v131_v17 = vand.u32 4294901760, %v22_v13  ;;  %v40_v19 = vld [vmem:[%s6192_s1 + $0xa8] sm:$0xff]  ;;  %v23_v23 = vld [vmem:[%s6192_s1 + $0x20] sm:$0xff]  ;;  %v4581_v25 = vsub.f32 %v37_v7, %v176_v10  ;;  %v41_v37 = vld [vmem:[%s6192_s1 + $0xb0] sm:$0xff] }
   0x5   :  { %v4560_v15 = vsub.f32 %v19_v2, %v122_v6  ;;  %v4568_v20 = vpack.c.bf16 %v125_v9, %v122_v6  ;;  %v4570_v21 = vsub.f32 %v20_v5, %v125_v9  ;;  %v4572_v22 = vpack.c.bf16 %v179_v11, %v176_v10  ;;  %v24_v24 = vld [vmem:[%s6192_s1 + $0x28] sm:$0xff]  ;;  %v42_v42 = vld [vmem:[%s6192_s1 + $0xb8] sm:$0xff]  ;;  %v25_v55 = vld [vmem:[%s6192_s1 + $0x30] sm:$0xff] }
   0x6   :  { %3880 = vmatprep.subr.bf16.mxu0 %v4558_v14  ;;  %v4583_v26 = vsub.f32 %v38_v8, %v179_v11  ;;  %v4585_v27 = vpack.c.bf16 %v131_v17, %v128_v16  ;;  %v4587_v28 = vsub.f32 %v21_v12, %v128_v16  ;;  %v182_v29 = vand.u32 4294901760, %v39_v18  ;;  %v26_v56 = vld [vmem:[%s6192_s1 + $0x38] sm:$0xff]  ;;  %v43_v5 = vld [vmem:[%s6192_s1 + $0xc0] sm:$0xff]  ;;  %v44_v6 = vld [vmem:[%s6192_s1 + $0xc8] sm:$0xff] }
   0x7   :  { %3882 = vmatpush3.bf16.msra.mxu0 %v4568_v20  ;;  %v185_v30 = vand.u32 4294901760, %v40_v19  ;;  %v4590_v31 = vsub.f32 %v35_v0, %v170_v3  ;;  %v4592_v32 = vsub.f32 %v36_v1, %v173_v4  ;;  %v134_v33 = vand.u32 4294901760, %v23_v23  ;;  %v27_v11 = vld [vmem:[%s6192_s1 + $0x40] sm:$0xff] }
   0x8   :  { %3884 = vmatprep.subr.bf16.mxu0 %v4572_v22  ;;  %v137_v34 = vand.u32 4294901760, %v24_v24  ;;  %v6210_v35 = vand.u32 4294901760, %v4560_v15  ;;  %v6209_v36 = vand.u32 4294901760, %v4570_v21  ;;  %v4600_v38 = vsub.f32 %v22_v13, %v131_v17 }
   0x9   :  { %v4602_v39 = vpack.c.bf16 %v185_v30, %v182_v29  ;;  %v4604_v40 = vsub.f32 %v39_v18, %v182_v29  ;;  %v6215_v41 = vand.u32 4294901760, %v4590_v31  ;;  %v4610_v43 = vsub.f32 %v40_v19, %v185_v30  ;;  %v28_v29 = vld [vmem:[%s6192_s1 + $0x48] sm:$0xff] }
   0xa   :  { %v6212_v44 = vand.u32 4294901760, %v4592_v32  ;;  %v4613_v45 = vpack.c.bf16 %v137_v34, %v134_v33  ;;  %v4615_v46 = vsub.f32 %v23_v23, %v134_v33  ;;  %v237_v48 = vsub.f32 %v4560_v15, %v6210_v35 }
   0xb   :  { %3886 = vmatpush3.bf16.msra.mxu0 %v4585_v27  ;;  %v349_v47 = vsub.f32 %v4590_v31, %v6215_v41  ;;  %v244_v49 = vsub.f32 %v4570_v21, %v6209_v36  ;;  %v188_v50 = vand.u32 4294901760, %v41_v37  ;;  %v191_v52 = vand.u32 4294901760, %v42_v42 }
   0xc   :  { %3888 = vmatprep.subr.bf16.mxu0 %v4602_v39  ;;  %v356_v51 = vsub.f32 %v4592_v32, %v6212_v44  ;;  %v6207_v53 = vand.u32 4294901760, %v4581_v25  ;;  %v6206_v54 = vand.u32 4294901760, %v4583_v26  ;;  %v4639_v58 = vsub.f32 %v24_v24, %v137_v34 }
   0xd   :  { %v350_v57 = vand.u32 4294901760, %v349_v47  ;;  %v238_v59 = vand.u32 4294901760, %v237_v48  ;;  %v245_v60 = vand.u32 4294901760, %v244_v49  ;;  %v4641_v62 = vpack.c.bf16 %v191_v52, %v188_v50 }
   0xe   :  { %v357_v61 = vand.u32 4294901760, %v356_v51  ;;  %v4643_v63 = vsub.f32 %v41_v37, %v188_v50  ;;  %v363_v0 = vsub.f32 %v4581_v25, %v6207_v53  ;;  %v370_v2 = vsub.f32 %v4583_v26, %v6206_v54 }
   0xf   :  { %3890 = vmatpush3.bf16.msra.mxu0 %v4613_v45  ;;  %v3913_v1 = vpack.c.bf16 %v245_v60, %v238_v59  ;;  %v140_v3 = vand.u32 4294901760, %v25_v55  ;;  %v143_v4 = vand.u32 4294901760, %v26_v56  ;;  %v6205_v9 = vand.u32 4294901760, %v4587_v28 }
  0x10   :  { %v3911_v7 = vpack.c.bf16 %v357_v61, %v350_v57  ;;  %3892 = vmatprep.subr.bf16.mxu0 %v4641_v62  ;;  %v364_v8 = vand.u32 4294901760, %v363_v0  ;;  %v6202_v10 = vand.u32 4294901760, %v4600_v38  ;;  %v4664_v12 = vsub.f32 %v42_v42, %v191_v52  ;;  %v46_v57 = vld [vmem:[%s6192_s1 + $0xd8] sm:$0xff] }
  0x11   :  { %v371_v13 = vand.u32 4294901760, %v370_v2  ;;  %v4666_v16 = vpack.c.bf16 %v143_v4, %v140_v3  ;;  %v4668_v17 = vsub.f32 %v25_v55, %v140_v3  ;;  %v251_v18 = vsub.f32 %v4587_v28, %v6205_v9 }
  0x12   :  { %3912 = vmatprep.subr.bf16.mxu1 %v3911_v7  ;;  %v258_v19 = vsub.f32 %v4600_v38, %v6202_v10  ;;  %v194_v23 = vand.u32 4294901760, %v43_v5  ;;  %v197_v24 = vand.u32 4294901760, %v44_v6  ;;  %v6200_v33 = vand.u32 4294901760, %v4604_v40 }
  0x13   :  { %3914 = vmatpush3.bf16.msra.mxu1 %v3913_v1  ;;  %v3915_v30 = vpack.c.bf16 %v371_v13, %v364_v8  ;;  %3894 = vmatpush3.bf16.msra.mxu0 %v4666_v16  ;;  %v6199_v34 = vand.u32 4294901760, %v4610_v43  ;;  %v146_v37 = vand.u32 4294901760, %v27_v11  ;;  %v4682_v42 = vsub.f32 %v26_v56, %v143_v4  ;;  %v45_v56 = vld [vmem:[%s6192_s1 + $0xd0] sm:$0xff] }
  0x14   :  { %v252_v47 = vand.u32 4294901760, %v251_v18  ;;  %v259_v48 = vand.u32 4294901760, %v258_v19  ;;  %v4684_v49 = vpack.c.bf16 %v197_v24, %v194_v23  ;;  %v4686_v50 = vsub.f32 %v43_v5, %v194_v23  ;;  %v29_v1 = vld [vmem:[%s6192_s1 + $0x50] sm:$0xff]  ;;  %v30_v18 = vld [vmem:[%s6192_s1 + $0x58] sm:$0xff] }
  0x15   :  { %3916 = vmatprep.subr.bf16.mxu1 %v3915_v30  ;;  %v377_v51 = vsub.f32 %v4604_v40, %v6200_v33  ;;  %v384_v52 = vsub.f32 %v4610_v43, %v6199_v34  ;;  %v149_v55 = vand.u32 4294901760, %v28_v29  ;;  %v4701_v60 = vsub.f32 %v44_v6, %v197_v24 }
  0x16   :  { %v3917_v59 = vpack.c.bf16 %v259_v48, %v252_v47  ;;  %3896 = vmatprep.subr.bf16.mxu0 %v4684_v49  ;;  %v6197_v61 = vand.u32 4294901760, %v4615_v46  ;;  %v6196_v0 = vand.u32 4294901760, %v4639_v58  ;;  %v4710_v5 = vsub.f32 %v27_v11, %v146_v37 }
  0x17   :  { %v378_v2 = vand.u32 4294901760, %v377_v51  ;;  %v385_v3 = vand.u32 4294901760, %v384_v52  ;;  %v4708_v4 = vpack.c.bf16 %v149_v55, %v146_v37  ;;  %v200_v8 = vand.u32 4294901760, %v45_v56 }
  0x18   :  { %3918 = vmatpush3.bf16.msra.mxu1 %v3917_v59  ;;  %v265_v6 = vsub.f32 %v4615_v46, %v6197_v61  ;;  %v272_v7 = vsub.f32 %v4639_v58, %v6196_v0  ;;  %v203_v13 = vand.u32 4294901760, %v46_v57 }
  0x19   :  { %7 = vsyncpa [#allocation3], 0  ;;  %v3919_v19 = vpack.c.bf16 %v385_v3, %v378_v2  ;;  %3898 = vmatpush3.bf16.msra.mxu0 %v4708_v4  ;;  %v6195_v11 = vand.u32 4294901760, %v4643_v63  ;;  %v6194_v23 = vand.u32 4294901760, %v4664_v12  ;;  %v152_v24 = vand.u32 4294901760, %v29_v1 }
  0x1a   :  { %v4724_v30 = vsub.f32 %v28_v29, %v149_v55  ;;  %v266_v37 = vand.u32 4294901760, %v265_v6  ;;  %v273_v47 = vand.u32 4294901760, %v272_v7  ;;  %v4726_v48 = vpack.c.bf16 %v203_v13, %v200_v8  ;;  %v47_v29 = vld [vmem:[%s6192_s1 + $0xe0] sm:$0xff]  ;;  %v48_v55 = vld [vmem:[%s6192_s1 + $0xe8] sm:$0xff] }
  0x1b   :  { %3920 = vmatprep.subr.bf16.mxu1 %v3919_v19  ;;  %v4728_v51 = vsub.f32 %v45_v56, %v200_v8  ;;  %v391_v52 = vsub.f32 %v4643_v63, %v6195_v11  ;;  %v398_v59 = vsub.f32 %v4664_v12, %v6194_v23  ;;  %v155_v2 = vand.u32 4294901760, %v30_v18  ;;  %v31_v8 = vld [vmem:[%s6192_s1 + $0x60] sm:$0xff] }
  0x1c   :  { %v3921_v3 = vpack.c.bf16 %v273_v47, %v266_v37  ;;  %3900 = vmatprep.subr.bf16.mxu0 %v4726_v48  ;;  %v4743_v56 = vsub.f32 %v46_v57, %v203_v13  ;;  %v6198_v6 = vand.u32 4294901760, %v4668_v17  ;;  %v6201_v7 = vand.u32 4294901760, %v4682_v42 }
  0x1d   :  { %v392_v19 = vand.u32 4294901760, %v391_v52  ;;  %v399_v23 = vand.u32 4294901760, %v398_v59  ;;  %v4750_v11 = vpack.c.bf16 %v155_v2, %v152_v24  ;;  %v4752_v0 = vsub.f32 %v29_v1, %v152_v24  ;;  %v32_v52 = vld [vmem:[%s6192_s1 + $0x68] sm:$0xff] }
  0x1e   :  { %3922 = vmatpush3.bf16.msra.mxu1 %v3921_v3  ;;  %v279_v57 = vsub.f32 %v4668_v17, %v6198_v6  ;;  %v286_v13 = vsub.f32 %v4682_v42, %v6201_v7  ;;  %v206_v37 = vand.u32 4294901760, %v47_v29  ;;  %v209_v47 = vand.u32 4294901760, %v48_v55 }
  0x1f   :  { %6326 = vst [vmem:[#allocation5_spill] sm:$0xff] %v4750_v11  ;;  %v3923_v59 = vpack.c.bf16 %v399_v23, %v392_v19  ;;  %3902 = vmatpush3.bf16.msra.mxu0 %v4750_v11  ;;  %v6204_v1 = vand.u32 4294901760, %v4686_v50  ;;  %v6203_v24 = vand.u32 4294901760, %v4701_v60  ;;  %v158_v3 = vand.u32 4294901760, %v31_v8 }
  0x20   :  { %v4766_v61 = vsub.f32 %v30_v18, %v155_v2  ;;  %v280_v6 = vand.u32 4294901760, %v279_v57  ;;  %v287_v34 = vand.u32 4294901760, %v286_v13  ;;  %v4768_v33 = vpack.c.bf16 %v209_v47, %v206_v37  ;;  %v49_v18 = vld [vmem:[%s6192_s1 + $0xf0] sm:$0xff]  ;;  %v50_v2 = vld [vmem:[%s6192_s1 + $0xf8] sm:$0xff] }
  0x21   :  { %3924 = vmatprep.subr.bf16.mxu1 %v3923_v59  ;;  %v4770_v7 = vsub.f32 %v47_v29, %v206_v37  ;;  %v405_v23 = vsub.f32 %v4686_v50, %v6204_v1  ;;  %v412_v19 = vsub.f32 %v4701_v60, %v6203_v24  ;;  %v161_v10 = vand.u32 4294901760, %v32_v52  ;;  %v33_v59 = vld [vmem:[%s6192_s1 + $0x70] sm:$0xff] }
  0x22   :  { %6327 = vst [vmem:[#allocation6_spill] sm:$0xff] %v4768_v33  ;;  %v3925_v57 = vpack.c.bf16 %v287_v34, %v280_v6  ;;  %3904 = vmatprep.subr.bf16.mxu0 %v4768_v33  ;;  %v4785_v29 = vsub.f32 %v48_v55, %v209_v47  ;;  %v6208_v13 = vand.u32 4294901760, %v4710_v5  ;;  %v6211_v37 = vand.u32 4294901760, %v4724_v30 }
  0x23   :  { %v406_v24 = vand.u32 4294901760, %v405_v23  ;;  %v413_v1 = vand.u32 4294901760, %v412_v19  ;;  %v4792_v9 = vpack.c.bf16 %v161_v10, %v158_v3  ;;  %v4794_v54 = vsub.f32 %v31_v8, %v158_v3  ;;  %v34_v23 = vld [vmem:[%s6192_s1 + $0x78] sm:$0xff] }
  0x24   :  { %3926 = vmatpush3.bf16.msra.mxu1 %v3925_v57  ;;  %v293_v34 = vsub.f32 %v4710_v5, %v6208_v13  ;;  %v300_v55 = vsub.f32 %v4724_v30, %v6211_v37  ;;  %v212_v6 = vand.u32 4294901760, %v49_v18  ;;  %v215_v47 = vand.u32 4294901760, %v50_v2 }
  0x25   :  { %6328 = vst [vmem:[#allocation7_spill] sm:$0xff] %v4792_v9  ;;  %v3927_v19 = vpack.c.bf16 %v413_v1, %v406_v24  ;;  %3906 = vmatpush3.bf16.msra.mxu0 %v4792_v9  ;;  %v6214_v8 = vand.u32 4294901760, %v4728_v51  ;;  %v6213_v3 = vand.u32 4294901760, %v4743_v56  ;;  %v164_v57 = vand.u32 4294901760, %v33_v59 }
  0x26   :  { %v4808_v53 = vsub.f32 %v32_v52, %v161_v10  ;;  %v294_v13 = vand.u32 4294901760, %v293_v34  ;;  %v301_v36 = vand.u32 4294901760, %v300_v55  ;;  %v4810_v35 = vpack.c.bf16 %v215_v47, %v212_v6  ;;  %v13_v10 = vld [vmem:[%s6191_s0 + $0x8] sm:$0xff] }
  0x27   :  { %3928 = vmatprep.subr.bf16.mxu1 %v3927_v19  ;;  %v4812_v37 = vsub.f32 %v49_v18, %v212_v6  ;;  %v419_v1 = vsub.f32 %v4728_v51, %v6214_v8  ;;  %v426_v24 = vsub.f32 %v4743_v56, %v6213_v3  ;;  %v167_v44 = vand.u32 4294901760, %v34_v23  ;;  %v12_v6 = vld [vmem:[%s6191_s0] sm:$0xff] }
  0x28   :  { %6329 = vst [vmem:[#allocation8_spill] sm:$0xff] %v4810_v35  ;;  %v3929_v52 = vpack.c.bf16 %v301_v36, %v294_v13  ;;  %3908 = vmatprep.subr.bf16.mxu0 %v4810_v35  ;;  %v4824_v34 = vsub.f32 %v50_v2, %v215_v47  ;;  %v6218_v18 = vand.u32 4294901760, %v4752_v0  ;;  %v6219_v55 = vand.u32 4294901760, %v4766_v61 }
  0x29   :  { %v420_v19 = vand.u32 4294901760, %v419_v1  ;;  %v427_v3 = vand.u32 4294901760, %v426_v24  ;;  %v4831_v8 = vpack.c.bf16 %v167_v44, %v164_v57  ;;  %v4833_v41 = vsub.f32 %v33_v59, %v164_v57 }
  0x2a   :  { %3930 = vmatpush3.bf16.msra.mxu1 %v3929_v52  ;;  %v307_v36 = vsub.f32 %v4752_v0, %v6218_v18  ;;  %v314_v2 = vsub.f32 %v4766_v61, %v6219_v55  ;;  %v4841_v13 = vand.u32 4294901760, %v13_v10  ;;  %v6222_v47 = vand.u32 4294901760, %v4770_v7 }
  0x2b   :  { %6330 = vst [vmem:[#allocation9_spill] sm:$0xff] %v4831_v8  ;;  %v3931_v35 = vpack.c.bf16 %v427_v3, %v420_v19  ;;  %3910 = vmatpush3.bf16.msra.mxu0 %v4831_v8  ;;  %v6228_v1 = vand.u32 4294901760, %v4785_v29  ;;  %v3943_v59 = vpack.c.bf16 %v4592_v32, %v4590_v31  ;;  %v4848_v57 = vand.u32 4294901760, %v12_v6 }
  0x2c   :  { %6331 = vst [vmem:[#allocation10_spill] sm:$0xff] %v4841_v13  ;;  %v308_v24 = vand.u32 4294901760, %v307_v36  ;;  %v315_v52 = vand.u32 4294901760, %v314_v2  ;;  %v4851_v18 = vsub.f32 %v13_v10, %v4841_v13  ;;  %v433_v55 = vsub.f32 %v4770_v7, %v6222_v47  ;;  %458 = vmatprep.mubr.f32.mxu1 %v4841_v13 }
  0x2d   :  { %3932 = vmatprep.subr.bf16.mxu1 %v3931_v35  ;;  %v440_v3 = vsub.f32 %v4785_v29, %v6228_v1  ;;  %3944 = vmatprep.subr.bf16.mxu0 %v3943_v59  ;;  %v4861_v19 = vsub.f32 %v12_v6, %v4848_v57  ;;  %v6227_v36 = vand.u32 4294901760, %v4794_v54  ;;  %v6229_v10 = vand.u32 4294901760, %v4808_v53 }
  0x2e   :  { %v4865_v2 = vsub.f32 %v34_v23, %v167_v44  ;;  %v3933_v8 = vpack.c.bf16 %v315_v52, %v308_v24  ;;  %v6230_v47 = vand.u32 4294901760, %v4851_v18  ;;  %v434_v9 = vand.u32 4294901760, %v433_v55 }
  0x2f   :  { %v441_v13 = vand.u32 4294901760, %v440_v3  ;;  %v225_v35 = vand.u32 4294901760, %v4861_v19  ;;  %v321_v59 = vsub.f32 %v4794_v54, %v6227_v36  ;;  %v328_v6 = vsub.f32 %v4808_v53, %v6229_v10 }
  0x30   :  { %3934 = vmatpush3.bf16.msra.mxu1 %v3933_v8  ;;  %v220_v44 = vsub.f32 %v4851_v18, %v6230_v47  ;;  %v3945_v23 = vpack.c.bf16 %v4570_v21, %v4560_v15  ;;  %v6235_v55 = vand.u32 4294901760, %v4812_v37  ;;  %v6238_v24 = vand.u32 4294901760, %v4824_v34 }
  0x31   :  { %v3935_v52 = vpack.c.bf16 %v441_v13, %v434_v9  ;;  %v226_v3 = vsub.f32 %v4861_v19, %v225_v35  ;;  %v322_v36 = vand.u32 4294901760, %v321_v59  ;;  %v329_v1 = vand.u32 4294901760, %v328_v6 }
  0x32   :  { %v221_v10 = vand.u32 4294901760, %v220_v44  ;;  %v447_v8 = vsub.f32 %v4812_v37, %v6235_v55  ;;  %v454_v47 = vsub.f32 %v4824_v34, %v6238_v24  ;;  %v6237_v33 = vand.u32 4294901760, %v4833_v41 }
  0x33   :  { %3936 = vmatprep.subr.bf16.mxu1 %v3935_v52  ;;  %v227_v11 = vand.u32 4294901760, %v226_v3  ;;  %v3937_v9 = vpack.c.bf16 %v329_v1, %v322_v36  ;;  %v3947_v13 = vpack.c.bf16 %v4583_v26, %v4581_v25  ;;  %v6236_v59 = vand.u32 4294901760, %v4865_v2 }
  0x34   :  { %222 = vmatprep.mubr.f32.mxu0 %v221_v10  ;;  %v448_v6 = vand.u32 4294901760, %v447_v8  ;;  %v455_v44 = vand.u32 4294901760, %v454_v47  ;;  %v335_v55 = vsub.f32 %v4833_v41, %v6237_v33  ;;  %v3949_v3 = vpack.c.bf16 %v4600_v38, %v4587_v28 }
  0x35   :  { %228 = vmatmul.mubr.f32.vlgmr.msra.gmra.mrb[0].mxu0 %v227_v11  ;;  %3938 = vmatpush3.bf16.msra.mxu1 %v3937_v9  ;;  %v342_v52 = vsub.f32 %v4865_v2, %v6236_v59  ;;  %v3951_v10 = vpack.c.bf16 %v4610_v43, %v4604_v40  ;;  %v3953_v11 = vpack.c.bf16 %v4639_v58, %v4615_v46  ;;  %v6333_v9 = vand.u32 4294901760, %v4592_v32 }
  0x36   :  { %3946 = vmatpush3.bf16.msra.mxu0 %v3945_v23  ;;  %v3939_v1 = vpack.c.bf16 %v455_v44, %v448_v6  ;;  %v336_v36 = vand.u32 4294901760, %v335_v55  ;;  %595 = vmatprep.mubr.f32.mxu0 %v4851_v18  ;;  %v3955_v8 = vpack.c.bf16 %v4664_v12, %v4643_v63  ;;  %v6332_v55 = vand.u32 4294901760, %v4590_v31 }
  0x37   :  { %3948 = vmatprep.subr.bf16.mxu0 %v3947_v13  ;;  %v343_v47 = vand.u32 4294901760, %v342_v52  ;;  %v6334_v44 = vand.u32 4294901760, %v4560_v15  ;;  %v6335_v13 = vand.u32 4294901760, %v4570_v21  ;;  %v6336_v59 = vand.u32 4294901760, %v4581_v25 }
  0x38   :  { %3940 = vmatprep.subr.bf16.mxu1 %v3939_v1  ;;  %v4007_v6 = vpack.c.bf16 %v6333_v9, %v6332_v55  ;;  %v6337_v1 = vand.u32 4294901760, %v4583_v26  ;;  %v6338_v24 = vand.u32 4294901760, %v4587_v28  ;;  %v6340_v31 = vand.u32 4294901760, %v4604_v40 }
  0x39   :  { %v3941_v23 = vpack.c.bf16 %v343_v47, %v336_v36  ;;  %v4009_v52 = vpack.c.bf16 %v6335_v13, %v6334_v44  ;;  %v6339_v36 = vand.u32 4294901760, %v4600_v38  ;;  %v6341_v32 = vand.u32 4294901760, %v4610_v43  ;;  %v6355_v13 = vld [vmem:[#allocation10_spill] sm:$0xff] }
  0x3a   :  { %v4011_v33 = vpack.c.bf16 %v6337_v1, %v6336_v59  ;;  %3950 = vmatpush3.bf16.msra.mxu0 %v3949_v3  ;;  %v6342_v15 = vand.u32 4294901760, %v4615_v46  ;;  %v6343_v21 = vand.u32 4294901760, %v4639_v58  ;;  %v6344_v25 = vand.u32 4294901760, %v4643_v63  ;;  %v68_v1 = vld [vmem:[%s6192_s1 + $0x188] sm:$0xff] }
  0x3b   :  { %v4013_v47 = vpack.c.bf16 %v6339_v36, %v6338_v24  ;;  %v4015_v55 = vpack.c.bf16 %v6341_v32, %v6340_v31  ;;  %v6345_v26 = vand.u32 4294901760, %v4664_v12  ;;  %3942 = vmatpush3.bf16.msra.mxu1 %v3941_v23  ;;  %3952 = vmatprep.subr.bf16.mxu0 %v3951_v10  ;;  %v6346_v28 = vand.u32 4294901760, %v4668_v17  ;;  %v51_v36 = vld [vmem:[%s6192_s1 + $0x100] sm:$0xff]  ;;  %v6356_v31 = vld [vmem:[#allocation7_spill] sm:$0xff] }
  0x3c   :  { %v4934_v9 = vpack.c.bf16 %v6343_v21, %v6342_v15  ;;  %v6347_v38 = vand.u32 4294901760, %v4682_v42  ;;  %v6348_v43 = vand.u32 4294901760, %v4686_v50  ;;  %v6349_v46 = vand.u32 4294901760, %v4701_v60  ;;  %3976 = vmatprep.subr.bf16.mxu1 %v4558_v14  ;;  %v6357_v32 = vld [vmem:[#allocation8_spill] sm:$0xff] }
  0x3d   :  { %v4940_v59 = vpack.c.bf16 %v6345_v26, %v6344_v25  ;;  %v6350_v63 = vand.u32 4294901760, %v4710_v5  ;;  %v6351_v12 = vand.u32 4294901760, %v4724_v30  ;;  %v3957_v3 = vpack.c.bf16 %v4682_v42, %v4668_v17  ;;  %v6358_v26 = vld [vmem:[#allocation9_spill] sm:$0xff] }
  0x3e   :  { %v4946_v40 = vpack.c.bf16 %v6347_v38, %v6346_v28  ;;  %v4952_v58 = vpack.c.bf16 %v6349_v46, %v6348_v43  ;;  %460 = vmatmul.mubr.f32.vlgmr.msra.gmra.mrb[0].mxu1 %v4848_v57  ;;  %3954 = vmatpush3.bf16.msra.mxu0 %v3953_v11  ;;  %v3959_v10 = vpack.c.bf16 %v4701_v60, %v4686_v50  ;;  %v6352_v23 = vand.u32 4294901760, %v4851_v18  ;;  %v6353_v18 = vld [vmem:[#allocation5_spill] sm:$0xff]  ;;  %v6354_v11 = vld [vmem:[#allocation6_spill] sm:$0xff]  ;;  %v70_v38 = vld [vmem:[%s6192_s1 + $0x198] sm:$0xff] }
  0x3f   :  { %v4958_v24 = vpack.c.bf16 %v6351_v12, %v6350_v63  ;;  %3978 = vmatpush3.bf16.msra.mxu1 %v4568_v20  ;;  %3956 = vmatprep.subr.bf16.mxu0 %v3955_v8  ;;  %v3961_v44 = vpack.c.bf16 %v4724_v30, %v4710_v5  ;;  %v3963_v17 = vpack.c.bf16 %v4743_v56, %v4728_v51  ;;  %v67_v8 = vld [vmem:[%s6192_s1 + $0x180] sm:$0xff]  ;;  %v1035_v15 = vand.u32 4294901760, %v68_v1  ;;  %v69_v28 = vld [vmem:[%s6192_s1 + $0x190] sm:$0xff] }
  0x40   :  { %3980 = vmatprep.subr.bf16.mxu1 %v4572_v22  ;;  %702 = vmatprep.mubr.f32.mxu1 %v6352_v23  ;;  %v3965_v42 = vpack.c.bf16 %v4766_v61, %v4752_v0  ;;  %v3967_v50 = vpack.c.bf16 %v4785_v29, %v4770_v7  ;;  %v3969_v60 = vpack.c.bf16 %v4808_v53, %v4794_v54  ;;  %v984_v21 = vand.u32 4294901760, %v51_v36  ;;  %v53_v43 = vld [vmem:[%s6192_s1 + $0x110] sm:$0xff] }
  0x41   :  { %v3971_v5 = vpack.c.bf16 %v4824_v34, %v4812_v37  ;;  %v3973_v30 = vpack.c.bf16 %v4865_v2, %v4833_v41  ;;  %v6360_v12 = vand.u32 4294901760, %v4743_v56  ;;  %v1041_v23 = vand.u32 4294901760, %v70_v38 }
  0x42   :  { %3958 = vmatpush3.bf16.msra.mxu0 %v3957_v3  ;;  %v5028_v46 = vsub.f32 %v51_v36, %v984_v21  ;;  %vm117_vm0 = vcmask 130048   ;;  %vm4516_vm1 = vmmov 0   ;;  %vm3168_vm2 = vcmask 80896  }
  0x43   :  { %3982 = vmatpush3.bf16.msra.mxu1 %v4585_v27  ;;  %3960 = vmatprep.subr.bf16.mxu0 %v3959_v10  ;;  %v1038_v10 = vand.u32 4294901760, %v69_v28 }
  0x44   :  { %3984 = vmatprep.subr.bf16.mxu1 %v4602_v39 }
  0x45   :  { %v5095_v36 = vpack.c.bf16 %v1041_v23, %v1038_v10 }
  0x46   :  { %3962 = vmatpush3.bf16.msra.mxu0 %v3961_v44  ;;  %v6361_v44 = vand.u32 4294901760, %v4752_v0  ;;  %v6366_v0 = vand.u32 4294901760, %v4808_v53  ;;  %v15_v53 = vld [vmem:[%s6191_s0 + $0x18] sm:$0xff] }
  0x47   :  { %3986 = vmatpush3.bf16.msra.mxu1 %v4613_v45  ;;  %3964 = vmatprep.subr.bf16.mxu0 %v3963_v17  ;;  %v6362_v17 = vand.u32 4294901760, %v4766_v61  ;;  %v6365_v61 = vand.u32 4294901760, %v4794_v54  ;;  %6371 = vst [vmem:[#allocation5_spill] sm:$0xff] %v5095_v36 }
  0x48   :  { %3988 = vmatprep.subr.bf16.mxu1 %v4641_v62 }
  0x4a   :  { %3966 = vmatpush3.bf16.msra.mxu0 %v3965_v42  ;;  %v4029_v42 = vpack.c.bf16 %v6362_v17, %v6361_v44  ;;  %v5105_v44 = vand.u32 4294901760, %v15_v53 }
  0x4b   :  { %3990 = vmatpush3.bf16.msra.mxu1 %v4666_v16  ;;  %3968 = vmatprep.subr.bf16.mxu0 %v3967_v50  ;;  %v71_v50 = vld [vmem:[%s6192_s1 + $0x1a0] sm:$0xff] }
  0x4c   :  { %3992 = vmatprep.subr.bf16.mxu1 %v4684_v49  ;;  %6373 = vst [vmem:[#allocation10_spill] sm:$0xff] %v5105_v44 }
  0x4e   :  { %3970 = vmatpush3.bf16.msra.mxu0 %v3969_v60 }
  0x4f   :  { %3994 = vmatpush3.bf16.msra.mxu1 %v4708_v4  ;;  %3972 = vmatprep.subr.bf16.mxu0 %v3971_v5  ;;  %v6369_v5 = vand.u32 4294901760, %v4833_v41  ;;  %v55_v41 = vld [vmem:[%s6192_s1 + $0x120] sm:$0xff] }
  0x50   :  { %3996 = vmatprep.subr.bf16.mxu1 %v4726_v48 }
  0x52   :  { %3974 = vmatpush3.bf16.msra.mxu0 %v3973_v30  ;;  %v6370_v30 = vand.u32 4294901760, %v4865_v2  ;;  %v6247_v2 = vand.u32 4294901760, %v5028_v46 }
  0x53   :  { %3998 = vmatpush3.bf16.msra.mxu1 %v6353_v18  ;;  %4008 = vmatprep.subr.bf16.mxu0 %v4007_v6  ;;  %v52_v6 = vld [vmem:[%s6192_s1 + $0x108] sm:$0xff] }
  0x54   :  { %4000 = vmatprep.subr.bf16.mxu1 %v6354_v11  ;;  %v987_v25 = vand.u32 4294901760, %v52_v6 }
  0x55   :  { %598 = vmatmul.mubr.f32.vlgmr.msra.gmra.mrb[2].mxu0 %v4861_v19  ;;  %v6363_v19 = vand.u32 4294901760, %v4770_v7  ;;  %v5062_v7 = vpack.c.bf16 %v6366_v0, %v6365_v61 }
  0x56   :  { %4010 = vmatpush3.bf16.msra.mxu0 %v4009_v52  ;;  %872 = vmatprep.mubr.f32.mxu0 %v6355_v13  ;;  %v1032_v52 = vand.u32 4294901760, %v67_v8  ;;  %v5030_v63 = vsub.f32 %v52_v6, %v987_v25  ;;  %v1044_v6 = vand.u32 4294901760, %v71_v50 }
  0x57   :  { %4002 = vmatpush3.bf16.msra.mxu1 %v6356_v31  ;;  %4012 = vmatprep.subr.bf16.mxu0 %v4011_v33 }
  0x58   :  { %4004 = vmatprep.subr.bf16.mxu1 %v6357_v32  ;;  %v5018_v33 = vsub.f32 %v67_v8, %v1032_v52  ;;  %v5074_v8 = vpack.c.bf16 %v6370_v30, %v6369_v5  ;;  %v5081_v54 = vpack.c.bf16 %v1035_v15, %v1032_v52  ;;  %v5133_v17 = vsub.f32 %v71_v50, %v1044_v6  ;;  %v58_v50 = vld [vmem:[%s6192_s1 + $0x138] sm:$0xff] }
  0x5a   :  { %4014 = vmatpush3.bf16.msra.mxu0 %v4013_v47  ;;  %v54_v47 = vld [vmem:[%s6192_s1 + $0x118] sm:$0xff] }
  0x5b   :  { %4006 = vmatpush3.bf16.msra.mxu1 %v6358_v26  ;;  %4016 = vmatprep.subr.bf16.mxu0 %v4015_v55  ;;  %v5026_v55 = vsub.f32 %v68_v1, %v1035_v15  ;;  %v993_v56 = vand.u32 4294901760, %v54_v47  ;;  %v5093_v1 = vpack.c.bf16 %v987_v25, %v984_v21  ;;  %v5099_v15 = vsub.f32 %v69_v28, %v1038_v10  ;;  %v74_v28 = vld [vmem:[%s6192_s1 + $0x1b8] sm:$0xff] }
  0x5c   :  { %4040 = vmatprep.subr.bf16.mxu1 %v4558_v14  ;;  %v6359_v14 = vand.u32 4294901760, %v4728_v51  ;;  %v990_v51 = vand.u32 4294901760, %v53_v43  ;;  %v996_v25 = vand.u32 4294901760, %v55_v41 }
  0x5e   :  { %706 = vmatmul.mubr.f32.vlgmr.msra.gmra.mrb[2].mxu1 %v225_v35  ;;  %4018 = vmatpush3.bf16.msra.mxu0 %v4934_v9  ;;  %v4027_v3 = vpack.c.bf16 %v6360_v12, %v6359_v14  ;;  %v6364_v35 = vand.u32 4294901760, %v4785_v29  ;;  %v6367_v29 = vand.u32 4294901760, %v4812_v37  ;;  %v6248_v37 = vand.u32 4294901760, %v5026_v55 }
  0x5f   :  { %4042 = vmatpush3.bf16.msra.mxu1 %v4568_v20  ;;  %4020 = vmatprep.subr.bf16.mxu0 %v4940_v59  ;;  %v72_v20 = vld [vmem:[%s6192_s1 + $0x1a8] sm:$0xff]  ;;  %v6368_v59 = vand.u32 4294901760, %v4824_v34  ;;  %v5101_v14 = vsub.f32 %v70_v38, %v1041_v23  ;;  %v5103_v12 = vpack.c.bf16 %v993_v56, %v990_v51  ;;  %v5119_v38 = vsub.f32 %v54_v47, %v993_v56 }
  0x60   :  { %v5049_v9 = vpack.c.bf16 %v6364_v35, %v6363_v19  ;;  %4044 = vmatprep.subr.bf16.mxu1 %v4572_v22  ;;  %976 = vmatprep.mubr.f32.mxu1 %v6355_v13  ;;  %v6251_v22 = vand.u32 4294901760, %v5018_v33  ;;  %v56_v34 = vld [vmem:[%s6192_s1 + $0x128] sm:$0xff]  ;;  %v6246_v13 = vand.u32 4294901760, %v5030_v63  ;;  %v1047_v52 = vand.u32 4294901760, %v72_v20 }
  0x61   :  { %v5068_v60 = vpack.c.bf16 %v6368_v59, %v6367_v29  ;;  %6372 = vst [vmem:[#allocation6_spill] sm:$0xff] %v5103_v12  ;;  %v5138_v19 = vsub.f32 %v15_v53, %v5105_v44  ;;  %v6242_v56 = vand.u32 4294901760, %v5099_v15  ;;  %v6241_v61 = vand.u32 4294901760, %v5101_v14 }
  0x62   :  { %4022 = vmatpush3.bf16.msra.mxu0 %v4946_v40  ;;  %v5108_v40 = vsub.f32 %v53_v43, %v990_v51  ;;  %v1211_v21 = vsub.f32 %v5018_v33, %v6251_v22  ;;  %v1099_v43 = vsub.f32 %v5028_v46, %v6247_v2  ;;  %v1106_v10 = vsub.f32 %v5030_v63, %v6246_v13 }
  0x63   :  { %4046 = vmatpush3.bf16.msra.mxu1 %v4585_v27  ;;  %4024 = vmatprep.subr.bf16.mxu0 %v4952_v58  ;;  %v999_v27 = vand.u32 4294901760, %v56_v34  ;;  %v73_v58 = vld [vmem:[%s6192_s1 + $0x1b0] sm:$0xff]  ;;  %v5131_v23 = vpack.c.bf16 %v1047_v52, %v1044_v6  ;;  %v5135_v47 = vsub.f32 %v72_v20, %v1047_v52  ;;  %v1053_v51 = vand.u32 4294901760, %v74_v28 }
  0x64   :  { %4048 = vmatprep.subr.bf16.mxu1 %v4602_v39  ;;  %v1218_v39 = vsub.f32 %v5026_v55, %v6248_v37  ;;  %v1050_v35 = vand.u32 4294901760, %v73_v58  ;;  %v1212_v20 = vand.u32 4294901760, %v1211_v21  ;;  %v1100_v59 = vand.u32 4294901760, %v1099_v43 }
  0x65   :  { %6374 = vst [vmem:[#allocation7_spill] sm:$0xff] %v5131_v23  ;;  %v5150_v0 = vpack.c.bf16 %v999_v27, %v996_v25  ;;  %v1107_v5 = vand.u32 4294901760, %v1106_v10  ;;  %v6239_v30 = vand.u32 4294901760, %v5108_v40  ;;  %v1005_v6 = vand.u32 4294901760, %v58_v50 }
  0x66   :  { %4026 = vmatpush3.bf16.msra.mxu0 %v4958_v24  ;;  %v57_v24 = vld [vmem:[%s6192_s1 + $0x130] sm:$0xff]  ;;  %v1219_v29 = vand.u32 4294901760, %v1218_v39  ;;  %v6240_v52 = vand.u32 4294901760, %v5119_v38  ;;  %v6252_v21 = vand.u32 4294901760, %v5138_v19  ;;  %v6243_v39 = vand.u32 4294901760, %v5135_v47 }
  0x67   :  { %4050 = vmatpush3.bf16.msra.mxu1 %v4613_v45  ;;  %4028 = vmatprep.subr.bf16.mxu0 %v4027_v3  ;;  %6375 = vst [vmem:[#allocation8_spill] sm:$0xff] %v5150_v0  ;;  %v5152_v45 = vsub.f32 %v55_v41, %v996_v25  ;;  %v5154_v3 = vsub.f32 %v56_v34, %v999_v27  ;;  %v1002_v53 = vand.u32 4294901760, %v57_v24 }
  0x68   :  { %4052 = vmatprep.subr.bf16.mxu1 %v4641_v62  ;;  %v75_v62 = vld [vmem:[%s6192_s1 + $0x1c0] sm:$0xff]  ;;  %v5164_v41 = vpack.c.bf16 %v1053_v51, %v1050_v35  ;;  %v1232_v34 = vsub.f32 %v5101_v14, %v6241_v61  ;;  %v5173_v25 = vsub.f32 %v73_v58, %v1050_v35  ;;  %v5175_v27 = vsub.f32 %v74_v28, %v1053_v51 }
  0x69   :  { %v5182_v43 = vpack.c.bf16 %v1219_v29, %v1212_v20  ;;  %v5184_v10 = vpack.c.bf16 %v1107_v5, %v1100_v59  ;;  %v1056_v58 = vand.u32 4294901760, %v75_v62  ;;  %v5190_v28 = vpack.c.bf16 %v1005_v6, %v1002_v53 }
  0x6a   :  { %4030 = vmatpush3.bf16.msra.mxu0 %v4029_v42  ;;  %6376 = vst [vmem:[#allocation9_spill] sm:$0xff] %v5164_v41  ;;  %v1225_v42 = vsub.f32 %v5099_v15, %v6242_v56  ;;  %v1120_v35 = vsub.f32 %v5119_v38, %v6240_v52  ;;  %v6244_v51 = vand.u32 4294901760, %v5152_v45  ;;  %v1082_v20 = vsub.f32 %v5138_v19, %v6252_v21  ;;  %v60_v56 = vld [vmem:[%s6192_s1 + $0x148] sm:$0xff] }
  0x6b   :  { %4054 = vmatpush3.bf16.msra.mxu1 %v4666_v16  ;;  %4032 = vmatprep.subr.bf16.mxu0 %v5049_v9  ;;  %v76_v16 = vld [vmem:[%s6192_s1 + $0x1c8] sm:$0xff]  ;;  %v6245_v9 = vand.u32 4294901760, %v5133_v17  ;;  %6377 = vst [vmem:[#allocation11_spill] sm:$0xff] %v5190_v28  ;;  %v1233_v59 = vand.u32 4294901760, %v1232_v34  ;;  %v5206_v52 = vsub.f32 %v57_v24, %v1002_v53  ;;  %v5208_v61 = vsub.f32 %v58_v50, %v1005_v6 }
  0x6c   :  { %4056 = vmatprep.subr.bf16.mxu1 %v4684_v49  ;;  %v1113_v49 = vsub.f32 %v5108_v40, %v6239_v30  ;;  %v1226_v29 = vand.u32 4294901760, %v1225_v42  ;;  %v1059_v5 = vand.u32 4294901760, %v76_v16  ;;  %v6249_v30 = vand.u32 4294901760, %v5154_v3 }
  0x6d   :  { %v5216_v34 = vsub.f32 %v75_v62, %v1056_v58  ;;  %v6253_v24 = vand.u32 4294901760, %v5175_v27  ;;  %v1121_v50 = vand.u32 4294901760, %v1120_v35  ;;  %v1127_v6 = vsub.f32 %v5152_v45, %v6244_v51  ;;  %v77_v62 = vld [vmem:[%s6192_s1 + $0x1d0] sm:$0xff] }
  0x6e   :  { %4034 = vmatpush3.bf16.msra.mxu0 %v5062_v7  ;;  %v59_v7 = vld [vmem:[%s6192_s1 + $0x140] sm:$0xff]  ;;  %v1114_v42 = vand.u32 4294901760, %v1113_v49  ;;  %v78_v49 = vld [vmem:[%s6192_s1 + $0x1d8] sm:$0xff]  ;;  %v5237_v35 = vpack.c.bf16 %v1059_v5, %v1056_v58  ;;  %v1134_v51 = vsub.f32 %v5154_v3, %v6249_v30  ;;  %v1011_v37 = vand.u32 4294901760, %v60_v56 }
  0x6f   :  { %4058 = vmatpush3.bf16.msra.mxu1 %v4708_v4  ;;  %4036 = vmatprep.subr.bf16.mxu0 %v5068_v60  ;;  %v1239_v4 = vsub.f32 %v5133_v17, %v6245_v9  ;;  %v1246_v60 = vsub.f32 %v5135_v47, %v6243_v39  ;;  %v1008_v53 = vand.u32 4294901760, %v59_v7  ;;  %v1083_v39 = vand.u32 4294901760, %v1082_v20  ;;  %v62_v58 = vld [vmem:[%s6192_s1 + $0x158] sm:$0xff] }
  0x70   :  { %4060 = vmatprep.subr.bf16.mxu1 %v4726_v48  ;;  %v6250_v48 = vand.u32 4294901760, %v5173_v25  ;;  %6378 = vst [vmem:[#allocation12_spill] sm:$0xff] %v5237_v35  ;;  %v5243_v9 = vsub.f32 %v76_v16, %v1059_v5  ;;  %v1062_v20 = vand.u32 4294901760, %v77_v62  ;;  %v1260_v16 = vsub.f32 %v5175_v27, %v6253_v24 }
  0x71   :  { %v1240_v13 = vand.u32 4294901760, %v1239_v4  ;;  %v1247_v2 = vand.u32 4294901760, %v1246_v60  ;;  %v5261_v5 = vsub.f32 %v59_v7, %v1008_v53  ;;  %v1128_v4 = vand.u32 4294901760, %v1127_v6 }
  0x72   :  { %4038 = vmatpush3.bf16.msra.mxu0 %v5074_v8  ;;  %v5235_v8 = vpack.c.bf16 %v1233_v59, %v1226_v29  ;;  %v1065_v29 = vand.u32 4294901760, %v78_v49  ;;  %v5259_v59 = vpack.c.bf16 %v1121_v50, %v1114_v42  ;;  %v1135_v30 = vand.u32 4294901760, %v1134_v51  ;;  %v79_v42 = vld [vmem:[%s6192_s1 + $0x1e0] sm:$0xff] }
  0x73   :  { %4062 = vmatpush3.bf16.msra.mxu1 %v6353_v18  ;;  %4072 = vmatprep.subr.bf16.mxu0 %v5081_v54  ;;  %v61_v18 = vld [vmem:[%s6192_s1 + $0x150] sm:$0xff]  ;;  %v1017_v22 = vand.u32 4294901760, %v62_v58  ;;  %v5271_v7 = vpack.c.bf16 %v1247_v2, %v1240_v13  ;;  %v5273_v50 = vpack.c.bf16 %v1011_v37, %v1008_v53  ;;  %v6254_v51 = vand.u32 4294901760, %v5216_v34 }
  0x74   :  { %4064 = vmatprep.subr.bf16.mxu1 %v6354_v11  ;;  %v1253_v11 = vsub.f32 %v5173_v25, %v6250_v48  ;;  %v1014_v48 = vand.u32 4294901760, %v61_v18  ;;  %v5281_v6 = vpack.c.bf16 %v1065_v29, %v1062_v20  ;;  %v1261_v21 = vand.u32 4294901760, %v1260_v16 }
  0x75   :  { %874 = vmatmul.mubr.f32.vlgmr.msra.gmra.mrb[4].mxu0 %v4848_v57  ;;  %v5292_v2 = vsub.f32 %v78_v49, %v1065_v29  ;;  %v6383_v13 = vand.u32 4294901760, %v5206_v52  ;;  %v1068_v53 = vand.u32 4294901760, %v79_v42  ;;  %v6384_v60 = vand.u32 4294901760, %v5208_v61 }
  0x76   :  { %4074 = vmatpush3.bf16.msra.mxu0 %v5093_v1  ;;  %1084 = vmatprep.mubr.f32.mxu0 %v1083_v39  ;;  %v5275_v39 = vsub.f32 %v60_v56, %v1011_v37  ;;  %6380 = vst [vmem:[#allocation14_spill] sm:$0xff] %v5281_v6  ;;  %v1254_v24 = vand.u32 4294901760, %v1253_v11  ;;  %v5290_v37 = vsub.f32 %v77_v62, %v1062_v20 }
  0x77   :  { %4066 = vmatpush3.bf16.msra.mxu1 %v6356_v31  ;;  %4076 = vmatprep.subr.bf16.mxu0 %v5095_v36  ;;  %v80_v31 = vld [vmem:[%s6192_s1 + $0x1e8] sm:$0xff]  ;;  %6382 = vst [vmem:[#allocation16_spill] sm:$0xff] %v5292_v2  ;;  %v1141_v56 = vsub.f32 %v5206_v52, %v6383_v13  ;;  %v5299_v11 = vpack.c.bf16 %v1135_v30, %v1128_v4  ;;  %v6390_v36 = vand.u32 4294901760, %v5292_v2 }
  0x78   :  { %4068 = vmatprep.subr.bf16.mxu1 %v6357_v32  ;;  %6379 = vst [vmem:[#allocation13_spill] sm:$0xff] %v5275_v39  ;;  %v5287_v32 = vld [vmem:[%s6192_s1 + $0x160] sm:$0xff]  ;;  %6381 = vst [vmem:[#allocation15_spill] sm:$0xff] %v5290_v37  ;;  %v5301_v16 = vpack.c.bf16 %v1017_v22, %v1014_v48  ;;  %v1148_v62 = vsub.f32 %v5208_v61, %v6384_v60  ;;  %v1071_v20 = vand.u32 4294901760, %v80_v31  ;;  %v5317_v30 = vld [vmem:[%s6192_s1 + $0x168] sm:$0xff]  ;;  %v6385_v60 = vand.u32 4294901760, %v5243_v9 }
  0x79   :  { %v5307_v49 = vsub.f32 %v61_v18, %v1014_v48  ;;  %v5309_v29 = vsub.f32 %v62_v58, %v1017_v22  ;;  %v4115_v13 = vpack.c.bf16 %v1261_v21, %v1254_v24  ;;  %v5328_v18 = vld [vmem:[%s6192_s1 + $0x1f0] sm:$0xff]  ;;  %v5333_v58 = vld [vmem:[%s6192_s1 + $0x1f8] sm:$0xff]  ;;  %v1142_v21 = vand.u32 4294901760, %v1141_v56 }
  0x7a   :  { %4078 = vmatpush3.bf16.msra.mxu0 %v5103_v12  ;;  %v5337_v24 = vsub.f32 %v79_v42, %v1068_v53  ;;  %v14_v22 = vld [vmem:[%s6191_s0 + $0x10] sm:$0xff]  ;;  %v1149_v48 = vand.u32 4294901760, %v1148_v62  ;;  %v5346_v4 = vpack.c.bf16 %v1071_v20, %v1068_v53  ;;  %v1023_v42 = vand.u32 4294901760, %v5317_v30 }
  0x7b   :  { %4070 = vmatpush3.bf16.msra.mxu1 %v6358_v26  ;;  %4080 = vmatprep.subr.bf16.mxu0 %v5131_v23  ;;  %v1267_v26 = vsub.f32 %v5216_v34, %v6254_v51  ;;  %v6386_v51 = vand.u32 4294901760, %v5287_v32  ;;  %v5362_v53 = vld [vmem:[%s6192_s1 + $0x170] sm:$0xff]  ;;  %v6389_v23 = vand.u32 4294901760, %v5290_v37 }
  0x7c   :  { %4104 = vmatprep.subr.bf16.mxu1 %v5182_v43  ;;  %v1274_v43 = vsub.f32 %v5243_v9, %v6385_v60 }
  0x7d   :  { %v1268_v56 = vand.u32 4294901760, %v1267_v26  ;;  %v5355_v60 = vsub.f32 %v5287_v32, %v6386_v51  ;;  %v6387_v51 = vand.u32 4294901760, %v5261_v5  ;;  %v1281_v12 = vsub.f32 %v5290_v37, %v6389_v23 }
  0x7e   :  { %978 = vmatmul.mubr.f32.vlgmr.msra.gmra.mrb[4].mxu1 %v4848_v57  ;;  %4082 = vmatpush3.bf16.msra.mxu0 %v5150_v0  ;;  %v5348_v57 = vsub.f32 %v80_v31, %v1071_v20  ;;  %v1074_v0 = vand.u32 4294901760, %v5328_v18  ;;  %v5367_v31 = vld [vmem:[%s6192_s1 + $0x178] sm:$0xff]  ;;  %v6388_v20 = vand.u32 4294901760, %v5275_v39 }
  0x7f   :  { %4106 = vmatpush3.bf16.msra.mxu1 %v5184_v10  ;;  %4084 = vmatprep.subr.bf16.mxu0 %v5164_v41  ;;  %v1077_v10 = vand.u32 4294901760, %v5333_v58  ;;  %v1155_v62 = vsub.f32 %v5261_v5, %v6387_v51  ;;  %v5376_v41 = vand.u32 4294901760, %v14_v22  ;;  %v1029_v23 = vand.u32 4294901760, %v5367_v31 }
  0x80   :  { %4108 = vmatprep.subr.bf16.mxu1 %v5235_v8  ;;  %1320 = vmatprep.mubr.f32.mxu1 %v5105_v44  ;;  %v1275_v8 = vand.u32 4294901760, %v1274_v43  ;;  %v1162_v26 = vsub.f32 %v5275_v39, %v6388_v20  ;;  %v1288_v43 = vsub.f32 %v5292_v2, %v6390_v36  ;;  %v4117_v20 = vpack.c.bf16 %v1149_v48, %v1142_v21 }
  0x81   :  { %v5390_v39 = vsub.f32 %v5317_v30, %v1023_v42  ;;  %v5396_v36 = vsub.f32 %v5328_v18, %v1074_v0  ;;  %v5399_v44 = vsub.f32 %v5333_v58, %v1077_v10  ;;  %v6279_v51 = vand.u32 4294901760, %v5348_v57 }
  0x82   :  { %4086 = vmatpush3.bf16.msra.mxu0 %v5190_v28  ;;  %v1026_v28 = vand.u32 4294901760, %v5362_v53  ;;  %v4119_v48 = vpack.c.bf16 %v1275_v8, %v1268_v56  ;;  %v1156_v21 = vand.u32 4294901760, %v1155_v62  ;;  %v1163_v30 = vand.u32 4294901760, %v1162_v26 }
  0x83   :  { %4110 = vmatpush3.bf16.msra.mxu1 %v5259_v59  ;;  %4088 = vmatprep.subr.bf16.mxu0 %v5237_v35  ;;  %v5404_v35 = vsub.f32 %v14_v22, %v5376_v41  ;;  %v1282_v2 = vand.u32 4294901760, %v1281_v12  ;;  %v6391_v18 = vand.u32 4294901760, %v5307_v49  ;;  %v6392_v58 = vand.u32 4294901760, %v5309_v29 }
  0x84   :  { %4112 = vmatprep.subr.bf16.mxu1 %v5271_v7  ;;  %v1289_v7 = vand.u32 4294901760, %v1288_v43  ;;  %v5416_v56 = vsub.f32 %v5362_v53, %v1026_v28  ;;  %v5419_v22 = vsub.f32 %v5367_v31, %v1029_v23  ;;  %v6393_v62 = vand.u32 4294901760, %v5337_v24 }
  0x85   :  { %v1169_v37 = vsub.f32 %v5307_v49, %v6391_v18  ;;  %v1176_v59 = vsub.f32 %v5309_v29, %v6392_v58  ;;  %v1308_v43 = vand.u32 4294901760, %v5396_v36  ;;  %v6394_v31 = vand.u32 4294901760, %v5287_v32 }
  0x86   :  { %4090 = vmatpush3.bf16.msra.mxu0 %v5273_v50  ;;  %v1295_v26 = vsub.f32 %v5337_v24, %v6393_v62  ;;  %v5435_v58 = vpack.c.bf16 %v1077_v10, %v1074_v0  ;;  %v4121_v8 = vpack.c.bf16 %v1163_v30, %v1156_v21  ;;  %v4123_v62 = vpack.c.bf16 %v1289_v7, %v1282_v2 }
  0x87   :  { %4114 = vmatpush3.bf16.msra.mxu1 %v5299_v11  ;;  %4092 = vmatprep.subr.bf16.mxu0 %v5281_v6  ;;  %v1302_v11 = vsub.f32 %v5348_v57, %v6279_v51  ;;  %v5433_v18 = vpack.c.bf16 %v1023_v42, %v6394_v31  ;;  %v1170_v12 = vand.u32 4294901760, %v1169_v37  ;;  %v1177_v6 = vand.u32 4294901760, %v1176_v59 }
  0x88   :  { %4116 = vmatprep.subr.bf16.mxu1 %v4115_v13  ;;  %v1087_v13 = vand.u32 4294901760, %v5404_v35  ;;  %v6395_v51 = vand.u32 4294901760, %v5355_v60  ;;  %v6396_v32 = vand.u32 4294901760, %v5390_v39  ;;  %v6280_v42 = vand.u32 4294901760, %v5416_v56 }
  0x89   :  { %v6281_v10 = vand.u32 4294901760, %v5419_v22  ;;  %v1296_v21 = vand.u32 4294901760, %v1295_v26  ;;  %v1303_v2 = vand.u32 4294901760, %v1302_v11  ;;  %v1309_v37 = vsub.f32 %v5396_v36, %v1308_v43 }
  0x8a   :  { %4094 = vmatpush3.bf16.msra.mxu0 %v5301_v16  ;;  %v1183_v53 = vsub.f32 %v5355_v60, %v6395_v51  ;;  %v1190_v0 = vsub.f32 %v5390_v39, %v6396_v32  ;;  %v1088_v51 = vsub.f32 %v5404_v35, %v1087_v13  ;;  %v5458_v30 = vpack.c.bf16 %v1029_v23, %v1026_v28 }
  0x8b   :  { %4118 = vmatpush3.bf16.msra.mxu1 %v4117_v20  ;;  %4096 = vmatprep.subr.bf16.mxu0 %v5346_v4  ;;  %v6397_v20 = vand.u32 4294901760, %v5399_v44  ;;  %v4125_v7 = vpack.c.bf16 %v1177_v6, %v1170_v12  ;;  %v1197_v31 = vsub.f32 %v5416_v56, %v6280_v42  ;;  %v1204_v32 = vsub.f32 %v5419_v22, %v6281_v10 }
  0x8c   :  { %4120 = vmatprep.subr.bf16.mxu1 %v4119_v48  ;;  %v4135_v48 = vpack.c.bf16 %v5026_v55, %v5018_v33  ;;  %v1184_v26 = vand.u32 4294901760, %v1183_v53  ;;  %v1191_v11 = vand.u32 4294901760, %v1190_v0  ;;  %v4127_v28 = vpack.c.bf16 %v1303_v2, %v1296_v21 }
  0x8d   :  { %v1316_v59 = vsub.f32 %v5399_v44, %v6397_v20  ;;  %v1310_v23 = vand.u32 4294901760, %v1309_v37  ;;  %v1089_v12 = vand.u32 4294901760, %v1088_v51  ;;  %v4139_v0 = vpack.c.bf16 %v5101_v14, %v5099_v15  ;;  %v6398_v51 = vld [vmem:[#allocation5_spill] sm:$0xff] }
  0x8e   :  { %4098 = vmatpush3.bf16.msra.mxu0 %v5433_v18  ;;  %v4129_v53 = vpack.c.bf16 %v1191_v11, %v1184_v26  ;;  %v1198_v20 = vand.u32 4294901760, %v1197_v31  ;;  %v1205_v42 = vand.u32 4294901760, %v1204_v32  ;;  %v4143_v2 = vpack.c.bf16 %v5135_v47, %v5133_v17  ;;  %v6401_v11 = vld [vmem:[#allocation6_spill] sm:$0xff]  ;;  %v6402_v31 = vld [vmem:[#allocation15_spill] sm:$0xff]  ;;  %v6403_v32 = vld [vmem:[#allocation16_spill] sm:$0xff] }
  0x8f   :  { %4122 = vmatpush3.bf16.msra.mxu1 %v4121_v8  ;;  %4100 = vmatprep.subr.bf16.mxu0 %v5435_v58  ;;  %v1317_v6 = vand.u32 4294901760, %v1316_v59  ;;  %v4137_v8 = vpack.c.bf16 %v5030_v63, %v5028_v46  ;;  %v4145_v37 = vpack.c.bf16 %v5154_v3, %v5152_v45  ;;  %v4147_v59 = vpack.c.bf16 %v5175_v27, %v5173_v25 }
  0x90   :  { %4124 = vmatprep.subr.bf16.mxu1 %v4123_v62  ;;  %v4141_v62 = vpack.c.bf16 %v5119_v38, %v5108_v40  ;;  %v4133_v21 = vpack.c.bf16 %v1205_v42, %v1198_v20  ;;  %v4149_v42 = vpack.c.bf16 %v5208_v61, %v5206_v52  ;;  %v4163_v20 = vpack.c.bf16 %v5399_v44, %v5396_v36 }
  0x91   :  { %v4131_v10 = vpack.c.bf16 %v1317_v6, %v1310_v23  ;;  %v6404_v23 = vld [vmem:[#allocation7_spill] sm:$0xff]  ;;  %v4157_v6 = vpack.c.bf16 %v5309_v29, %v5307_v49 }
  0x92   :  { %4102 = vmatpush3.bf16.msra.mxu0 %v5458_v30 }
  0x93   :  { %4126 = vmatpush3.bf16.msra.mxu1 %v4125_v7  ;;  %4136 = vmatprep.subr.bf16.mxu0 %v4135_v48  ;;  %v6399_v7 = vand.u32 4294901760, %v5138_v19  ;;  %v6400_v48 = vld [vmem:[#allocation13_spill] sm:$0xff] }
  0x94   :  { %4128 = vmatprep.subr.bf16.mxu1 %v4127_v28  ;;  %v4153_v26 = vpack.c.bf16 %v6400_v48, %v5261_v5  ;;  %v4155_v28 = vpack.c.bf16 %v6403_v32, %v6402_v31 }
  0x95   :  { %1090 = vmatmul.mubr.f32.vlgmr.msra.gmra.mrb[6].mxu0 %v1089_v12  ;;  %v6405_v12 = vld [vmem:[#allocation8_spill] sm:$0xff] }
  0x96   :  { %4138 = vmatpush3.bf16.msra.mxu0 %v4137_v8  ;;  %1457 = vmatprep.mubr.f32.mxu0 %v5138_v19  ;;  %v4159_v19 = vpack.c.bf16 %v5348_v57, %v5337_v24  ;;  %v6406_v8 = vld [vmem:[#allocation9_spill] sm:$0xff] }
  0x97   :  { %4130 = vmatpush3.bf16.msra.mxu1 %v4129_v53  ;;  %4140 = vmatprep.subr.bf16.mxu0 %v4139_v0  ;;  %v4161_v53 = vpack.c.bf16 %v5390_v39, %v5355_v60  ;;  %v6407_v0 = vld [vmem:[#allocation11_spill] sm:$0xff] }
  0x98   :  { %4132 = vmatprep.subr.bf16.mxu1 %v4131_v10  ;;  %v4151_v10 = vpack.c.bf16 %v5243_v9, %v5216_v34 }
  0x9a   :  { %4142 = vmatpush3.bf16.msra.mxu0 %v4141_v62  ;;  %v6408_v62 = vld [vmem:[#allocation12_spill] sm:$0xff] }
  0x9b   :  { %4134 = vmatpush3.bf16.msra.mxu1 %v4133_v21  ;;  %4144 = vmatprep.subr.bf16.mxu0 %v4143_v2  ;;  %v4165_v21 = vpack.c.bf16 %v5419_v22, %v5416_v56  ;;  %v6409_v2 = vand.u32 4294901760, %v5018_v33  ;;  %v99_v33 = vld [vmem:[%s6192_s1 + $0x280] sm:$0xff] }
  0x9c   :  { %4168 = vmatprep.subr.bf16.mxu1 %v5081_v54 }
  0x9e   :  { %1322 = vmatmul.mubr.f32.vlgmr.msra.gmra.mrb[6].mxu1 %v5376_v41  ;;  %4146 = vmatpush3.bf16.msra.mxu0 %v4145_v37  ;;  %v6410_v37 = vand.u32 4294901760, %v5026_v55  ;;  %v6416_v55 = vand.u32 4294901760, %v5108_v40  ;;  %v1894_v40 = vand.u32 4294901760, %v99_v33 }
  0x9f   :  { %4170 = vmatpush3.bf16.msra.mxu1 %v5093_v1  ;;  %4148 = vmatprep.subr.bf16.mxu0 %v4147_v59 }
  0xa0   :  { %4172 = vmatprep.subr.bf16.mxu1 %v6398_v51  ;;  %1564 = vmatprep.mubr.f32.mxu1 %v6399_v7  ;;  %v4199_v59 = vpack.c.bf16 %v6410_v37, %v6409_v2  ;;  %v6413_v7 = vand.u32 4294901760, %v5030_v63  ;;  %v84_v2 = vld [vmem:[%s6192_s1 + $0x208] sm:$0xff] }
  0xa2   :  { %4150 = vmatpush3.bf16.msra.mxu0 %v4149_v42  ;;  %v6411_v42 = vld [vmem:[#allocation14_spill] sm:$0xff] }
  0xa3   :  { %4174 = vmatpush3.bf16.msra.mxu1 %v6401_v11  ;;  %4152 = vmatprep.subr.bf16.mxu0 %v4151_v10  ;;  %v6412_v10 = vand.u32 4294901760, %v5028_v46  ;;  %v6417_v46 = vand.u32 4294901760, %v5119_v38  ;;  %v83_v38 = vld [vmem:[%s6192_s1 + $0x200] sm:$0xff] }
  0xa4   :  { %4176 = vmatprep.subr.bf16.mxu1 %v6404_v23 }
  0xa5   :  { %v4205_v63 = vpack.c.bf16 %v6417_v46, %v6416_v55  ;;  %v6426_v55 = vand.u32 4294901760, %v5208_v61  ;;  %v6430_v61 = vand.u32 4294901760, %v6400_v48  ;;  %v6434_v48 = vand.u32 4294901760, %v5309_v29  ;;  %v17_v29 = vld [vmem:[%s6191_s0 + $0x28] sm:$0xff] }
  0xa6   :  { %4154 = vmatpush3.bf16.msra.mxu0 %v4153_v26  ;;  %v4201_v26 = vpack.c.bf16 %v6413_v7, %v6412_v10  ;;  %v101_v10 = vld [vmem:[%s6192_s1 + $0x290] sm:$0xff]  ;;  %v102_v7 = vld [vmem:[%s6192_s1 + $0x298] sm:$0xff] }
  0xa7   :  { %4178 = vmatpush3.bf16.msra.mxu1 %v6405_v12  ;;  %4156 = vmatprep.subr.bf16.mxu0 %v4155_v28  ;;  %v6414_v28 = vand.u32 4294901760, %v5099_v15  ;;  %v6419_v15 = vand.u32 4294901760, %v5133_v17  ;;  %v6421_v17 = vand.u32 4294901760, %v5152_v45 }
  0xa8   :  { %4180 = vmatprep.subr.bf16.mxu1 %v6406_v8 }
  0xaa   :  { %4158 = vmatpush3.bf16.msra.mxu0 %v4157_v6  ;;  %v6415_v6 = vand.u32 4294901760, %v5101_v14  ;;  %v6420_v14 = vand.u32 4294901760, %v5135_v47  ;;  %v6422_v47 = vand.u32 4294901760, %v5154_v3  ;;  %v1849_v3 = vand.u32 4294901760, %v84_v2 }
  0xab   :  { %4182 = vmatpush3.bf16.msra.mxu1 %v6407_v0  ;;  %4160 = vmatprep.subr.bf16.mxu0 %v4159_v19 }
  0xac   :  { %4184 = vmatprep.subr.bf16.mxu1 %v6408_v62  ;;  %v4203_v19 = vpack.c.bf16 %v6415_v6, %v6414_v28  ;;  %v4209_v37 = vpack.c.bf16 %v6422_v47, %v6421_v17  ;;  %v6424_v28 = vand.u32 4294901760, %v5175_v27  ;;  %v1846_v6 = vand.u32 4294901760, %v83_v38 }
  0xad   :  { %v1903_v47 = vand.u32 4294901760, %v102_v7 }
  0xae   :  { %4162 = vmatpush3.bf16.msra.mxu0 %v4161_v53  ;;  %v6418_v53 = vld [vmem:[#allocation10_spill] sm:$0xff] }
  0xaf   :  { %4186 = vmatpush3.bf16.msra.mxu1 %v5273_v50  ;;  %4164 = vmatprep.subr.bf16.mxu0 %v4163_v20  ;;  %v4207_v20 = vpack.c.bf16 %v6420_v14, %v6419_v15  ;;  %v6428_v15 = vand.u32 4294901760, %v5243_v9  ;;  %v6432_v9 = vand.u32 4294901760, %v6403_v32  ;;  %v6435_v32 = vand.u32 4294901760, %v5337_v24 }
  0xb0   :  { %4188 = vmatprep.subr.bf16.mxu1 %v6411_v42  ;;  %v6437_v24 = vand.u32 4294901760, %v5355_v60  ;;  %v6441_v60 = vand.u32 4294901760, %v5419_v22  ;;  %v5659_v22 = vand.u32 4294901760, %v17_v29 }
  0xb2   :  { %4166 = vmatpush3.bf16.msra.mxu0 %v4165_v21  ;;  %v100_v21 = vld [vmem:[%s6192_s1 + $0x288] sm:$0xff]  ;;  %6443 = vst [vmem:[#allocation13_spill] sm:$0xff] %v5659_v22 }
  0xb3   :  { %4190 = vmatpush3.bf16.msra.mxu1 %v5301_v16  ;;  %4200 = vmatprep.subr.bf16.mxu0 %v4199_v59  ;;  %v1897_v59 = vand.u32 4294901760, %v100_v21 }
  0xb4   :  { %4192 = vmatprep.subr.bf16.mxu1 %v5346_v4 }
  0xb5   :  { %1460 = vmatmul.mubr.f32.vlgmr.msra.gmra.mrb[8].mxu0 %v5404_v35  ;;  %v5616_v35 = vsub.f32 %v83_v38, %v1846_v6 }
  0xb6   :  { %4202 = vmatpush3.bf16.msra.mxu0 %v4201_v26  ;;  %1734 = vmatprep.mubr.f32.mxu0 %v6418_v53  ;;  %v6423_v26 = vand.u32 4294901760, %v5173_v25  ;;  %v85_v25 = vld [vmem:[%s6192_s1 + $0x210] sm:$0xff] }
  0xb7   :  { %4194 = vmatpush3.bf16.msra.mxu1 %v5433_v18  ;;  %4204 = vmatprep.subr.bf16.mxu0 %v4203_v19  ;;  %v6425_v19 = vand.u32 4294901760, %v5206_v52  ;;  %v6429_v52 = vand.u32 4294901760, %v5261_v5  ;;  %v6433_v5 = vand.u32 4294901760, %v5307_v49  ;;  %v1852_v49 = vand.u32 4294901760, %v85_v25 }
  0xb8   :  { %4196 = vmatprep.subr.bf16.mxu1 %v5435_v58  ;;  %v4211_v45 = vpack.c.bf16 %v6424_v28, %v6423_v26  ;;  %v103_v26 = vld [vmem:[%s6192_s1 + $0x2a0] sm:$0xff]  ;;  %v104_v28 = vld [vmem:[%s6192_s1 + $0x2a8] sm:$0xff] }
  0xb9   :  { %v4213_v46 = vpack.c.bf16 %v6426_v55, %v6425_v19  ;;  %v4217_v27 = vpack.c.bf16 %v6430_v61, %v6429_v52  ;;  %v6436_v19 = vand.u32 4294901760, %v5348_v57  ;;  %v6438_v57 = vand.u32 4294901760, %v5390_v39 }
  0xba   :  { %4206 = vmatpush3.bf16.msra.mxu0 %v4205_v63  ;;  %v6427_v63 = vand.u32 4294901760, %v5216_v34  ;;  %v6431_v34 = vand.u32 4294901760, %v6402_v31  ;;  %v5605_v31 = vpack.c.bf16 %v6434_v48, %v6433_v5  ;;  %v1909_v38 = vand.u32 4294901760, %v104_v28 }
  0xbb   :  { %4198 = vmatpush3.bf16.msra.mxu1 %v5458_v30  ;;  %4208 = vmatprep.subr.bf16.mxu0 %v4207_v20  ;;  %v5577_v20 = vsub.f32 %v99_v33, %v1894_v40  ;;  %v1900_v33 = vand.u32 4294901760, %v101_v10  ;;  %v5611_v55 = vpack.c.bf16 %v6436_v19, %v6435_v32  ;;  %v5646_v61 = vsub.f32 %v102_v7, %v1903_v47  ;;  %v105_v7 = vld [vmem:[%s6192_s1 + $0x2b0] sm:$0xff] }
  0xbc   :  { %4232 = vmatprep.subr.bf16.mxu1 %v5081_v54  ;;  %v4215_v14 = vpack.c.bf16 %v6428_v15, %v6427_v63  ;;  %v86_v54 = vld [vmem:[%s6192_s1 + $0x218] sm:$0xff]  ;;  %v4219_v17 = vpack.c.bf16 %v6432_v9, %v6431_v34  ;;  %v5613_v63 = vsub.f32 %v100_v21, %v1897_v59  ;;  %v5628_v21 = vpack.c.bf16 %v6438_v57, %v6437_v24 }
  0xbd   :  { %v5644_v39 = vsub.f32 %v101_v10, %v1900_v33  ;;  %v5650_v34 = vpack.c.bf16 %v1849_v3, %v1846_v6  ;;  %v106_v6 = vld [vmem:[%s6192_s1 + $0x2b8] sm:$0xff]  ;;  %v6284_v5 = vand.u32 4294901760, %v5646_v61  ;;  %v5690_v48 = vsub.f32 %v17_v29, %v5659_v22 }
  0xbe   :  { %1568 = vmatmul.mubr.f32.vlgmr.msra.gmra.mrb[8].mxu1 %v1087_v13  ;;  %4210 = vmatpush3.bf16.msra.mxu0 %v4209_v37  ;;  %v5618_v13 = vsub.f32 %v84_v2, %v1849_v3  ;;  %v1855_v37 = vand.u32 4294901760, %v86_v54  ;;  %v6293_v2 = vand.u32 4294901760, %v5577_v20  ;;  %v6291_v36 = vand.u32 4294901760, %v5613_v63 }
  0xbf   :  { %4234 = vmatpush3.bf16.msra.mxu1 %v5093_v1  ;;  %4212 = vmatprep.subr.bf16.mxu0 %v4211_v45  ;;  %v1906_v1 = vand.u32 4294901760, %v103_v26  ;;  %v6439_v45 = vand.u32 4294901760, %v5399_v44  ;;  %6442 = vst [vmem:[#allocation5_spill] sm:$0xff] %v5650_v34  ;;  %v87_v44 = vld [vmem:[%s6192_s1 + $0x220] sm:$0xff] }
  0xc0   :  { %4236 = vmatprep.subr.bf16.mxu1 %v6398_v51  ;;  %1838 = vmatprep.mubr.f32.mxu1 %v6418_v53  ;;  %v6440_v51 = vand.u32 4294901760, %v5416_v56  ;;  %v5648_v53 = vpack.c.bf16 %v1897_v59, %v1894_v40  ;;  %v88_v56 = vld [vmem:[%s6192_s1 + $0x228] sm:$0xff]  ;;  %v5664_v40 = vpack.c.bf16 %v1855_v37, %v1852_v49  ;;  %v6290_v59 = vand.u32 4294901760, %v5616_v35 }
  0xc1   :  { %v5636_v15 = vpack.c.bf16 %v6439_v45, %v1308_v43  ;;  %v5662_v43 = vpack.c.bf16 %v1903_v47, %v1900_v33  ;;  %v6286_v10 = vand.u32 4294901760, %v5618_v13  ;;  %v5677_v3 = vsub.f32 %v86_v54, %v1855_v37 }
  0xc2   :  { %v5642_v52 = vpack.c.bf16 %v6441_v60, %v6440_v51  ;;  %4214 = vmatpush3.bf16.msra.mxu0 %v4213_v46  ;;  %6445 = vst [vmem:[#allocation15_spill] sm:$0xff] %v5664_v40  ;;  %v5679_v46 = vpack.c.bf16 %v1909_v38, %v1906_v1  ;;  %v1858_v9 = vand.u32 4294901760, %v87_v44  ;;  %v1861_v33 = vand.u32 4294901760, %v88_v56 }
  0xc3   :  { %4238 = vmatpush3.bf16.msra.mxu1 %v6401_v11  ;;  %4216 = vmatprep.subr.bf16.mxu0 %v4215_v14  ;;  %6444 = vst [vmem:[#allocation6_spill] sm:$0xff] %v5662_v43  ;;  %v5675_v11 = vsub.f32 %v85_v25, %v1852_v49  ;;  %v2073_v14 = vsub.f32 %v5577_v20, %v6293_v2  ;;  %v6285_v47 = vand.u32 4294901760, %v5644_v39  ;;  %v1912_v25 = vand.u32 4294901760, %v105_v7 }
  0xc4   :  { %4240 = vmatprep.subr.bf16.mxu1 %v6404_v23  ;;  %6446 = vst [vmem:[#allocation16_spill] sm:$0xff] %v5679_v46  ;;  %v2080_v23 = vsub.f32 %v5613_v63, %v6291_v36  ;;  %v1915_v54 = vand.u32 4294901760, %v106_v6  ;;  %v5693_v32 = vsub.f32 %v103_v26, %v1906_v1  ;;  %v1961_v19 = vsub.f32 %v5616_v35, %v6290_v59 }
  0xc5   :  { %v5702_v49 = vsub.f32 %v104_v28, %v1909_v38  ;;  %v2074_v37 = vand.u32 4294901760, %v2073_v14  ;;  %v6283_v26 = vand.u32 4294901760, %v5677_v3  ;;  %v5709_v29 = vpack.c.bf16 %v1861_v33, %v1858_v9  ;;  %v90_v28 = vld [vmem:[%s6192_s1 + $0x238] sm:$0xff] }
  0xc6   :  { %4218 = vmatpush3.bf16.msra.mxu0 %v4217_v27  ;;  %v1968_v27 = vsub.f32 %v5618_v13, %v6286_v10  ;;  %v5711_v24 = vsub.f32 %v87_v44, %v1858_v9  ;;  %v2087_v57 = vsub.f32 %v5644_v39, %v6285_v47  ;;  %v2081_v1 = vand.u32 4294901760, %v2080_v23 }
  0xc7   :  { %4242 = vmatpush3.bf16.msra.mxu1 %v6405_v12  ;;  %4220 = vmatprep.subr.bf16.mxu0 %v4219_v17  ;;  %v89_v12 = vld [vmem:[%s6192_s1 + $0x230] sm:$0xff]  ;;  %v6282_v17 = vand.u32 4294901760, %v5675_v11  ;;  %6447 = vst [vmem:[#allocation7_spill] sm:$0xff] %v5709_v29  ;;  %v5723_v38 = vsub.f32 %v88_v56, %v1861_v33  ;;  %v5725_v45 = vpack.c.bf16 %v1915_v54, %v1912_v25  ;;  %v6298_v51 = vand.u32 4294901760, %v5690_v48  ;;  %v108_v56 = vld [vmem:[%s6192_s1 + $0x2c8] sm:$0xff] }
  0xc8   :  { %4244 = vmatprep.subr.bf16.mxu1 %v6406_v8  ;;  %v2094_v8 = vsub.f32 %v5646_v61, %v6284_v5  ;;  %v1962_v60 = vand.u32 4294901760, %v1961_v19  ;;  %v1969_v44 = vand.u32 4294901760, %v1968_v27  ;;  %v5730_v14 = vsub.f32 %v105_v7, %v1912_v25 }
  0xc9   :  { %6448 = vst [vmem:[#allocation8_spill] sm:$0xff] %v5725_v45  ;;  %v1864_v9 = vand.u32 4294901760, %v89_v12  ;;  %v5739_v33 = vsub.f32 %v106_v6, %v1915_v54  ;;  %v1982_v7 = vsub.f32 %v5677_v3, %v6283_v26  ;;  %v2088_v23 = vand.u32 4294901760, %v2087_v57 }
  0xca   :  { %4222 = vmatpush3.bf16.msra.mxu0 %v5605_v31  ;;  %v107_v31 = vld [vmem:[%s6192_s1 + $0x2c0] sm:$0xff]  ;;  %v2095_v25 = vand.u32 4294901760, %v2094_v8  ;;  %v6288_v19 = vand.u32 4294901760, %v5693_v32  ;;  %v6287_v27 = vand.u32 4294901760, %v5702_v49  ;;  %v1921_v54 = vand.u32 4294901760, %v108_v56 }
  0xcb   :  { %4246 = vmatpush3.bf16.msra.mxu1 %v6407_v0  ;;  %4224 = vmatprep.subr.bf16.mxu0 %v5611_v55  ;;  %v1867_v0 = vand.u32 4294901760, %v90_v28  ;;  %v1975_v55 = vsub.f32 %v5675_v11, %v6282_v17  ;;  %v1918_v6 = vand.u32 4294901760, %v107_v31  ;;  %v91_v17 = vld [vmem:[%s6192_s1 + $0x240] sm:$0xff]  ;;  %v1944_v26 = vsub.f32 %v5690_v48, %v6298_v51 }
  0xcc   :  { %4248 = vmatprep.subr.bf16.mxu1 %v6408_v62  ;;  %v5750_v62 = vpack.c.bf16 %v2081_v1, %v2074_v37  ;;  %v5760_v57 = vpack.c.bf16 %v1969_v44, %v1962_v60  ;;  %v5762_v8 = vsub.f32 %v89_v12, %v1864_v9  ;;  %v6292_v37 = vand.u32 4294901760, %v5723_v38  ;;  %v109_v44 = vld [vmem:[%s6192_s1 + $0x2d0] sm:$0xff] }
  0xcd   :  { %v5767_v1 = vpack.c.bf16 %v1867_v0, %v1864_v9  ;;  %v5769_v5 = vsub.f32 %v90_v28, %v1867_v0  ;;  %v1976_v47 = vand.u32 4294901760, %v1975_v55  ;;  %v1983_v10 = vand.u32 4294901760, %v1982_v7  ;;  %v110_v9 = vld [vmem:[%s6192_s1 + $0x2d8] sm:$0xff] }
  0xce   :  { %4226 = vmatpush3.bf16.msra.mxu0 %v5628_v21  ;;  %v6289_v21 = vand.u32 4294901760, %v5711_v24  ;;  %v2101_v12 = vsub.f32 %v5693_v32, %v6288_v19  ;;  %v1870_v60 = vand.u32 4294901760, %v91_v17  ;;  %v5783_v28 = vpack.c.bf16 %v1921_v54, %v1918_v6 }
  0xcf   :  { %4250 = vmatpush3.bf16.msra.mxu1 %v5273_v50  ;;  %4228 = vmatprep.subr.bf16.mxu0 %v5636_v15  ;;  %6449 = vst [vmem:[#allocation9_spill] sm:$0xff] %v5767_v1  ;;  %v92_v50 = vld [vmem:[%s6192_s1 + $0x248] sm:$0xff]  ;;  %v5774_v15 = vpack.c.bf16 %v2095_v25, %v2088_v23  ;;  %v6294_v0 = vand.u32 4294901760, %v5730_v14  ;;  %v6295_v55 = vand.u32 4294901760, %v5739_v33  ;;  %v1945_v7 = vand.u32 4294901760, %v1944_v26 }
  0xd0   :  { %4252 = vmatprep.subr.bf16.mxu1 %v6411_v42  ;;  %v2108_v42 = vsub.f32 %v5702_v49, %v6287_v27  ;;  %6450 = vst [vmem:[#allocation11_spill] sm:$0xff] %v5783_v28  ;;  %v1873_v23 = vand.u32 4294901760, %v92_v50  ;;  %v1989_v25 = vsub.f32 %v5711_v24, %v6289_v21  ;;  %v1996_v27 = vsub.f32 %v5723_v38, %v6292_v37 }
  0xd1   :  { %v5804_v19 = vpack.c.bf16 %v1983_v10, %v1976_v47  ;;  %v5806_v26 = vsub.f32 %v108_v56, %v1921_v54  ;;  %v2102_v21 = vand.u32 4294901760, %v2101_v12  ;;  %v1924_v36 = vand.u32 4294901760, %v109_v44 }
  0xd2   :  { %4230 = vmatpush3.bf16.msra.mxu0 %v5642_v52  ;;  %v5795_v52 = vsub.f32 %v107_v31, %v1918_v6  ;;  %v6296_v31 = vand.u32 4294901760, %v5762_v8  ;;  %v6297_v6 = vand.u32 4294901760, %v5769_v5  ;;  %v2109_v59 = vand.u32 4294901760, %v2108_v42 }
  0xd3   :  { %4254 = vmatpush3.bf16.msra.mxu1 %v5301_v16  ;;  %4264 = vmatprep.subr.bf16.mxu0 %v5648_v53  ;;  %v93_v16 = vld [vmem:[%s6192_s1 + $0x250] sm:$0xff]  ;;  %v1927_v37 = vand.u32 4294901760, %v110_v9  ;;  %v5818_v10 = vsub.f32 %v91_v17, %v1870_v60  ;;  %v2115_v47 = vsub.f32 %v5730_v14, %v6294_v0  ;;  %v2122_v56 = vsub.f32 %v5739_v33, %v6295_v55 }
  0xd4   :  { %4256 = vmatprep.subr.bf16.mxu1 %v5346_v4  ;;  %v94_v4 = vld [vmem:[%s6192_s1 + $0x258] sm:$0xff]  ;;  %v5828_v54 = vpack.c.bf16 %v1873_v23, %v1870_v60  ;;  %v1990_v12 = vand.u32 4294901760, %v1989_v25  ;;  %v1997_v42 = vand.u32 4294901760, %v1996_v27  ;;  %v1876_v2 = vand.u32 4294901760, %v93_v16  ;;  %v112_v27 = vld [vmem:[%s6192_s1 + $0x2e8] sm:$0xff] }
  0xd5   :  { %1736 = vmatmul.mubr.f32.vlgmr.msra.gmra.mrb[10].mxu0 %v5376_v41  ;;  %v1879_v17 = vand.u32 4294901760, %v94_v4  ;;  %v2003_v0 = vsub.f32 %v5762_v8, %v6296_v31  ;;  %v6303_v60 = vand.u32 4294901760, %v5795_v52  ;;  %v5846_v25 = vsub.f32 %v92_v50, %v1873_v23  ;;  %v5865_v31 = vld [vmem:[%s6192_s1 + $0x260] sm:$0xff] }
  0xd6   :  { %4266 = vmatpush3.bf16.msra.mxu0 %v5650_v34  ;;  %1946 = vmatprep.mubr.f32.mxu0 %v1945_v7  ;;  %v2010_v7 = vsub.f32 %v5769_v5, %v6297_v6  ;;  %v5848_v55 = vpack.c.bf16 %v1927_v37, %v1924_v36  ;;  %v5852_v6 = vsub.f32 %v109_v44, %v1924_v36  ;;  %v2123_v34 = vand.u32 4294901760, %v2122_v56 }
  0xd7   :  { %4258 = vmatpush3.bf16.msra.mxu1 %v5433_v18  ;;  %4268 = vmatprep.subr.bf16.mxu0 %v5662_v43  ;;  %v111_v18 = vld [vmem:[%s6192_s1 + $0x2e0] sm:$0xff]  ;;  %v5854_v51 = vsub.f32 %v110_v9, %v1927_v37  ;;  %v2116_v43 = vand.u32 4294901760, %v2115_v47  ;;  %v1933_v23 = vand.u32 4294901760, %v112_v27  ;;  %v5868_v36 = vpack.c.bf16 %v1879_v17, %v1876_v2  ;;  %v5876_v9 = vld [vmem:[%s6192_s1 + $0x268] sm:$0xff] }
  0xd8   :  { %4260 = vmatprep.subr.bf16.mxu1 %v5435_v58  ;;  %v5844_v58 = vpack.c.bf16 %v2109_v59, %v2102_v21  ;;  %6451 = vst [vmem:[#allocation12_spill] sm:$0xff] %v5852_v6  ;;  %v5858_v59 = vpack.c.bf16 %v1997_v42, %v1990_v12  ;;  %v5860_v21 = vsub.f32 %v93_v16, %v1876_v2  ;;  %v1930_v50 = vand.u32 4294901760, %v111_v18  ;;  %v5893_v12 = vld [vmem:[%s6192_s1 + $0x2f8] sm:$0xff] }
  0xd9   :  { %6452 = vst [vmem:[#allocation14_spill] sm:$0xff] %v5854_v51  ;;  %v2004_v37 = vand.u32 4294901760, %v2003_v0  ;;  %v2011_v44 = vand.u32 4294901760, %v2010_v7  ;;  %v5878_v16 = vsub.f32 %v94_v4, %v1879_v17  ;;  %v6453_v47 = vand.u32 4294901760, %v5806_v26  ;;  %v5888_v0 = vld [vmem:[%s6192_s1 + $0x2f0] sm:$0xff] }
  0xda   :  { %4270 = vmatpush3.bf16.msra.mxu0 %v5664_v40  ;;  %v4307_v4 = vpack.c.bf16 %v2123_v34, %v2116_v43  ;;  %v1882_v42 = vand.u32 4294901760, %v5865_v31  ;;  %v1885_v34 = vand.u32 4294901760, %v5876_v9  ;;  %v1936_v17 = vand.u32 4294901760, %v5888_v0 }
  0xdb   :  { %4262 = vmatpush3.bf16.msra.mxu1 %v5458_v30  ;;  %4272 = vmatprep.subr.bf16.mxu0 %v5679_v46  ;;  %v2129_v30 = vsub.f32 %v5795_v52, %v6303_v60  ;;  %v2136_v56 = vsub.f32 %v5806_v26, %v6453_v47  ;;  %v16_v47 = vld [vmem:[%s6191_s0 + $0x20] sm:$0xff]  ;;  %v5905_v60 = vpack.c.bf16 %v1933_v23, %v1930_v50  ;;  %v1939_v2 = vand.u32 4294901760, %v5893_v12 }
  0xdc   :  { %4296 = vmatprep.subr.bf16.mxu1 %v5750_v62  ;;  %v5909_v62 = vsub.f32 %v112_v27, %v1933_v23  ;;  %v4309_v43 = vpack.c.bf16 %v2011_v44, %v2004_v37  ;;  %v6455_v23 = vand.u32 4294901760, %v5846_v25  ;;  %v5932_v44 = vand.u32 4294901760, %v16_v47 }
  0xdd   :  { %v2130_v7 = vand.u32 4294901760, %v2129_v30  ;;  %v2137_v27 = vand.u32 4294901760, %v2136_v56  ;;  %v6456_v30 = vand.u32 4294901760, %v5852_v6 }
  0xde   :  { %1840 = vmatmul.mubr.f32.vlgmr.msra.gmra.mrb[10].mxu1 %v5376_v41  ;;  %4274 = vmatpush3.bf16.msra.mxu0 %v5709_v29  ;;  %v5907_v41 = vsub.f32 %v111_v18, %v1930_v50  ;;  %v5923_v18 = vld [vmem:[%s6192_s1 + $0x278] sm:$0xff]  ;;  %v2024_v37 = vsub.f32 %v5846_v25, %v6455_v23  ;;  %v6457_v29 = vand.u32 4294901760, %v5854_v51  ;;  %v5946_v23 = vsub.f32 %v5865_v31, %v1882_v42 }
  0xdf   :  { %4298 = vmatpush3.bf16.msra.mxu1 %v5760_v57  ;;  %4276 = vmatprep.subr.bf16.mxu0 %v5725_v45  ;;  %v5918_v57 = vld [vmem:[%s6192_s1 + $0x270] sm:$0xff]  ;;  %v2143_v45 = vsub.f32 %v5852_v6, %v6456_v30  ;;  %v1891_v46 = vand.u32 4294901760, %v5923_v18  ;;  %v6322_v31 = vand.u32 4294901760, %v5909_v62 }
  0xe0   :  { %4300 = vmatprep.subr.bf16.mxu1 %v5774_v15  ;;  %2182 = vmatprep.mubr.f32.mxu1 %v5659_v22  ;;  %v6454_v15 = vand.u32 4294901760, %v5818_v10  ;;  %v2150_v56 = vsub.f32 %v5854_v51, %v6457_v29  ;;  %v1888_v30 = vand.u32 4294901760, %v5918_v57  ;;  %v5955_v29 = vsub.f32 %v5888_v0, %v1936_v17 }
  0xe1   :  { %v4311_v22 = vpack.c.bf16 %v2137_v27, %v2130_v7  ;;  %v5963_v51 = vsub.f32 %v16_v47, %v5932_v44  ;;  %v2144_v6 = vand.u32 4294901760, %v2143_v45  ;;  %v6458_v0 = vand.u32 4294901760, %v5860_v21 }
  0xe2   :  { %v2017_v50 = vsub.f32 %v5818_v10, %v6454_v15  ;;  %4278 = vmatpush3.bf16.msra.mxu0 %v5767_v1  ;;  %v5949_v1 = vsub.f32 %v5876_v9, %v1885_v34  ;;  %v5958_v15 = vsub.f32 %v5893_v12, %v1939_v2  ;;  %v2025_v9 = vand.u32 4294901760, %v2024_v37 }
  0xe3   :  { %4302 = vmatpush3.bf16.msra.mxu1 %v5804_v19  ;;  %4280 = vmatprep.subr.bf16.mxu0 %v5783_v28  ;;  %v2031_v40 = vsub.f32 %v5860_v21, %v6458_v0  ;;  %v6459_v12 = vand.u32 4294901760, %v5878_v16  ;;  %v5975_v7 = vsub.f32 %v5918_v57, %v1888_v30  ;;  %v5978_v47 = vsub.f32 %v5923_v18, %v1891_v46 }
  0xe4   :  { %4304 = vmatprep.subr.bf16.mxu1 %v5844_v58  ;;  %v2018_v28 = vand.u32 4294901760, %v2017_v50  ;;  %v2151_v58 = vand.u32 4294901760, %v2150_v56  ;;  %v6460_v50 = vand.u32 4294901760, %v5907_v41  ;;  %v6324_v57 = vand.u32 4294901760, %v5958_v15 }
  0xe5   :  { %v2038_v19 = vsub.f32 %v5878_v16, %v6459_v12  ;;  %v5990_v0 = vpack.c.bf16 %v1885_v34, %v1882_v42  ;;  %v5992_v18 = vpack.c.bf16 %v1939_v2, %v1936_v17  ;;  %v1949_v12 = vand.u32 4294901760, %v5963_v51 }
  0xe6   :  { %4282 = vmatpush3.bf16.msra.mxu0 %v5828_v54  ;;  %v2157_v37 = vsub.f32 %v5907_v41, %v6460_v50  ;;  %v4315_v27 = vpack.c.bf16 %v2151_v58, %v2144_v6  ;;  %v2032_v45 = vand.u32 4294901760, %v2031_v40  ;;  %v6462_v42 = vand.u32 4294901760, %v5949_v1 }
  0xe7   :  { %4306 = vmatpush3.bf16.msra.mxu1 %v5858_v59  ;;  %4284 = vmatprep.subr.bf16.mxu0 %v5848_v55  ;;  %v2164_v59 = vsub.f32 %v5909_v62, %v6322_v31  ;;  %v2039_v50 = vand.u32 4294901760, %v2038_v19  ;;  %v6461_v31 = vand.u32 4294901760, %v5946_v23  ;;  %v6323_v17 = vand.u32 4294901760, %v5975_v7 }
  0xe8   :  { %4308 = vmatprep.subr.bf16.mxu1 %v4307_v4  ;;  %v4313_v4 = vpack.c.bf16 %v2025_v9, %v2018_v28  ;;  %v2052_v2 = vsub.f32 %v5949_v1, %v6462_v42  ;;  %v6325_v34 = vand.u32 4294901760, %v5978_v47  ;;  %v2158_v28 = vand.u32 4294901760, %v2157_v37 }
  0xe9   :  { %v2045_v56 = vsub.f32 %v5946_v23, %v6461_v31  ;;  %v2165_v6 = vand.u32 4294901760, %v2164_v59  ;;  %v6463_v40 = vand.u32 4294901760, %v5955_v29  ;;  %v2178_v19 = vsub.f32 %v5958_v15, %v6324_v57 }
  0xea   :  { %4286 = vmatpush3.bf16.msra.mxu0 %v5868_v36  ;;  %v1950_v31 = vsub.f32 %v5963_v51, %v1949_v12  ;;  %v6015_v9 = vpack.c.bf16 %v1891_v46, %v1888_v30  ;;  %v4317_v58 = vpack.c.bf16 %v2039_v50, %v2032_v45  ;;  %v2053_v59 = vand.u32 4294901760, %v2052_v2 }
  0xeb   :  { %4310 = vmatpush3.bf16.msra.mxu1 %v4309_v43  ;;  %4288 = vmatprep.subr.bf16.mxu0 %v5905_v60  ;;  %v2171_v43 = vsub.f32 %v5955_v29, %v6463_v40  ;;  %v2046_v37 = vand.u32 4294901760, %v2045_v56  ;;  %v2059_v42 = vsub.f32 %v5975_v7, %v6323_v17  ;;  %v2066_v40 = vsub.f32 %v5978_v47, %v6325_v34 }
  0xec   :  { %4312 = vmatprep.subr.bf16.mxu1 %v4311_v22  ;;  %v4327_v22 = vpack.c.bf16 %v5613_v63, %v5577_v20  ;;  %v4319_v46 = vpack.c.bf16 %v2165_v6, %v2158_v28  ;;  %v2179_v45 = vand.u32 4294901760, %v2178_v19  ;;  %v1951_v50 = vand.u32 4294901760, %v1950_v31  ;;  %v6465_v31 = vld [vmem:[#allocation6_spill] sm:$0xff] }
  0xed   :  { %v2172_v30 = vand.u32 4294901760, %v2171_v43  ;;  %v4321_v56 = vpack.c.bf16 %v2053_v59, %v2046_v37  ;;  %v4331_v2 = vpack.c.bf16 %v5646_v61, %v5644_v39  ;;  %v2060_v17 = vand.u32 4294901760, %v2059_v42  ;;  %v6467_v37 = vld [vmem:[#allocation15_spill] sm:$0xff]  ;;  %v6468_v59 = vld [vmem:[#allocation12_spill] sm:$0xff]  ;;  %v6469_v42 = vld [vmem:[#allocation14_spill] sm:$0xff] }
  0xee   :  { %4290 = vmatpush3.bf16.msra.mxu0 %v5990_v0  ;;  %v2067_v57 = vand.u32 4294901760, %v2066_v40  ;;  %v4335_v6 = vpack.c.bf16 %v5702_v49, %v5693_v32  ;;  %v4337_v43 = vpack.c.bf16 %v5723_v38, %v5711_v24  ;;  %v4339_v19 = vpack.c.bf16 %v5739_v33, %v5730_v14 }
  0xef   :  { %4314 = vmatpush3.bf16.msra.mxu1 %v4313_v4  ;;  %4292 = vmatprep.subr.bf16.mxu0 %v5992_v18  ;;  %v4329_v4 = vpack.c.bf16 %v5618_v13, %v5616_v35  ;;  %v4323_v34 = vpack.c.bf16 %v2179_v45, %v2172_v30  ;;  %v4347_v40 = vpack.c.bf16 %v6469_v42, %v6468_v59  ;;  %v6471_v45 = vld [vmem:[#allocation7_spill] sm:$0xff] }
  0xf0   :  { %4316 = vmatprep.subr.bf16.mxu1 %v4315_v27  ;;  %v4333_v27 = vpack.c.bf16 %v5677_v3, %v5675_v11  ;;  %v4325_v28 = vpack.c.bf16 %v2067_v57, %v2060_v17  ;;  %v4341_v57 = vpack.c.bf16 %v5769_v5, %v5762_v8  ;;  %v6464_v17 = vld [vmem:[#allocation5_spill] sm:$0xff]  ;;  %v4349_v30 = vpack.c.bf16 %v5878_v16, %v5860_v21 }
  0xf2   :  { %4294 = vmatpush3.bf16.msra.mxu0 %v6015_v9 }
  0xf3   :  { %4318 = vmatpush3.bf16.msra.mxu1 %v4317_v58  ;;  %4328 = vmatprep.subr.bf16.mxu0 %v4327_v22  ;;  %v6466_v58 = vand.u32 4294901760, %v5690_v48  ;;  %v4345_v22 = vpack.c.bf16 %v5846_v25, %v5818_v10 }
  0xf4   :  { %4320 = vmatprep.subr.bf16.mxu1 %v4319_v46  ;;  %v6470_v46 = vld [vmem:[#allocation16_spill] sm:$0xff] }
  0xf5   :  { %1952 = vmatmul.mubr.f32.vlgmr.msra.gmra.mrb[12].mxu0 %v1951_v50  ;;  %v6472_v50 = vld [vmem:[#allocation8_spill] sm:$0xff] }
  0xf6   :  { %4330 = vmatpush3.bf16.msra.mxu0 %v4329_v4  ;;  %2319 = vmatprep.mubr.f32.mxu0 %v5690_v48  ;;  %v4351_v48 = vpack.c.bf16 %v5909_v62, %v5907_v41 }
  0xf7   :  { %4322 = vmatpush3.bf16.msra.mxu1 %v4321_v56  ;;  %4332 = vmatprep.subr.bf16.mxu0 %v4331_v2  ;;  %v4353_v2 = vpack.c.bf16 %v5949_v1, %v5946_v23 }
  0xf8   :  { %4324 = vmatprep.subr.bf16.mxu1 %v4323_v34  ;;  %v4343_v34 = vpack.c.bf16 %v5806_v26, %v5795_v52 }
  0xfa   :  { %4334 = vmatpush3.bf16.msra.mxu0 %v4333_v27 }
  0xfb   :  { %4326 = vmatpush3.bf16.msra.mxu1 %v4325_v28  ;;  %4336 = vmatprep.subr.bf16.mxu0 %v4335_v6  ;;  %v6473_v28 = vld [vmem:[#allocation9_spill] sm:$0xff]  ;;  %v4355_v6 = vpack.c.bf16 %v5958_v15, %v5955_v29 }
  0xfc   :  { %4360 = vmatprep.subr.bf16.mxu1 %v5648_v53 }
  0xfe   :  { %2184 = vmatmul.mubr.f32.vlgmr.msra.gmra.mrb[12].mxu1 %v5932_v44  ;;  %4338 = vmatpush3.bf16.msra.mxu0 %v4337_v43  ;;  %v6474_v43 = vld [vmem:[#allocation11_spill] sm:$0xff] }
  0xff   :  { %4362 = vmatpush3.bf16.msra.mxu1 %v6464_v17  ;;  %4340 = vmatprep.subr.bf16.mxu0 %v4339_v19  ;;  %v4357_v19 = vpack.c.bf16 %v5978_v47, %v5975_v7 }
 0x100   :  { %4364 = vmatprep.subr.bf16.mxu1 %v6465_v31  ;;  %2426 = vmatprep.mubr.f32.mxu1 %v6466_v58 }
 0x102   :  { %4342 = vmatpush3.bf16.msra.mxu0 %v4341_v57  ;;  %v6475_v57 = vand.u32 4294901760, %v5577_v20  ;;  %v6480_v20 = vand.u32 4294901760, %v5646_v61  ;;  %v6485_v61 = vand.u32 4294901760, %v5702_v49  ;;  %v6491_v49 = vand.u32 4294901760, %v5769_v5 }
 0x103   :  { %4366 = vmatpush3.bf16.msra.mxu1 %v6467_v37  ;;  %4344 = vmatprep.subr.bf16.mxu0 %v4343_v34  ;;  %v6476_v34 = vand.u32 4294901760, %v5613_v63  ;;  %v6496_v5 = vand.u32 4294901760, %v6468_v59  ;;  %v18_v59 = vld [vmem:[%s6191_s0 + $0x30] sm:$0xff]  ;;  %s4518_s0 = smov [#allocation2]  }
 0x104   :  { %4368 = vmatprep.subr.bf16.mxu1 %v6470_v46 }
 0x105   :  { %v4391_v58 = vpack.c.bf16 %v6476_v34, %v6475_v57  ;;  %v6483_v57 = vld [vmem:[#allocation13_spill] sm:$0xff] }
 0x106   :  { %4346 = vmatpush3.bf16.msra.mxu0 %v4345_v22 }
 0x107   :  { %4370 = vmatpush3.bf16.msra.mxu1 %v6471_v45  ;;  %4348 = vmatprep.subr.bf16.mxu0 %v4347_v40 }
 0x108   :  { %4372 = vmatprep.subr.bf16.mxu1 %v6472_v50  ;;  %v3221_v4 = vpop.f32.mrb[0].mxu0 }
 0x109   :  { %v3222_v56 = vpop.f32.mrb[1].mxu0 }
 0x10a   :  { %4350 = vmatpush3.bf16.msra.mxu0 %v4349_v30  ;;  %v3223_v27 = vadd.f32 %v3222_v56, %v3221_v4  ;;  %v6477_v30 = vand.u32 4294901760, %v5616_v35  ;;  %v6481_v35 = vand.u32 4294901760, %v5675_v11  ;;  %v6487_v11 = vand.u32 4294901760, %v5723_v38 }
 0x10b   :  { %4374 = vmatpush3.bf16.msra.mxu1 %v6473_v28  ;;  %4352 = vmatprep.subr.bf16.mxu0 %v4351_v48  ;;  %v6478_v48 = vand.u32 4294901760, %v5618_v13  ;;  %v6482_v13 = vand.u32 4294901760, %v5677_v3  ;;  %v6488_v3 = vand.u32 4294901760, %v5730_v14  ;;  %v6492_v38 = vand.u32 4294901760, %v5795_v52 }
 0x10c   :  { %4376 = vmatprep.subr.bf16.mxu1 %v6474_v43  ;;  %v6493_v14 = vand.u32 4294901760, %v5806_v26  ;;  %v6497_v52 = vand.u32 4294901760, %v6469_v42  ;;  %v6498_v26 = vand.u32 4294901760, %v5860_v21 }
 0x10d   :  { %v4393_v4 = vpack.c.bf16 %v6478_v48, %v6477_v30  ;;  %v119_v48 = vsel %vm117_vm0, %v18_v59, 0 }
 0x10e   :  { %4354 = vmatpush3.bf16.msra.mxu0 %v4353_v2  ;;  %v6479_v2 = vand.u32 4294901760, %v5644_v39  ;;  %v6484_v39 = vand.u32 4294901760, %v5693_v32  ;;  %v6490_v32 = vand.u32 4294901760, %v5762_v8 }
 0x10f   :  { %4378 = vmatpush3.bf16.msra.mxu1 %v5828_v54  ;;  %4356 = vmatprep.subr.bf16.mxu0 %v4355_v6 }
 0x110   :  { %4380 = vmatprep.subr.bf16.mxu1 %v5848_v55  ;;  %v4395_v63 = vpack.c.bf16 %v6480_v20, %v6479_v2  ;;  %v4399_v34 = vpack.c.bf16 %v6485_v61, %v6484_v39 }
 0x111   :  { %v3256_v22 = vpop.f32.mrb[0].mxu1 }
 0x112   :  { %v3257_v40 = vpop.f32.mrb[1].mxu1  ;;  %4358 = vmatpush3.bf16.msra.mxu0 %v4357_v19  ;;  %v4397_v19 = vpack.c.bf16 %v6482_v13, %v6481_v35  ;;  %v2774_v35 = vand.u32 4294901760, %v119_v48 }
 0x113   :  { %v3258_v56 = vadd.f32 %v3257_v40, %v3256_v22  ;;  %4382 = vmatpush3.bf16.msra.mxu1 %v5868_v36  ;;  %4392 = vmatprep.subr.bf16.mxu0 %v4391_v58  ;;  %v6489_v22 = vand.u32 4294901760, %v5739_v33  ;;  %v4407_v33 = vpack.c.bf16 %v6493_v14, %v6492_v38 }
 0x114   :  { %4384 = vmatprep.subr.bf16.mxu1 %v5905_v60 }
 0x115   :  { %v462_v6 = vadd.f32 %v3258_v56, %v3223_v27  ;;  %2322 = vmatmul.mubr.f32.vlgmr.msra.gmra.mrb[14].mxu0 %v5963_v51  ;;  %v6486_v27 = vand.u32 4294901760, %v5711_v24  ;;  %v4403_v40 = vpack.c.bf16 %v6489_v22, %v6488_v3  ;;  %v4405_v24 = vpack.c.bf16 %v6491_v49, %v6490_v32 }
 0x116   :  { %4394 = vmatpush3.bf16.msra.mxu0 %v4393_v4  ;;  %2596 = vmatprep.mubr.f32.mxu0 %v6483_v57  ;;  %v6495_v51 = vand.u32 4294901760, %v5846_v25  ;;  %v6501_v25 = vand.u32 4294901760, %v5909_v62  ;;  %v6502_v62 = vand.u32 4294901760, %v5946_v23  ;;  %v6505_v4 = vand.u32 4294901760, %v5958_v15 }
 0x117   :  { %4386 = vmatpush3.bf16.msra.mxu1 %v5990_v0  ;;  %4396 = vmatprep.subr.bf16.mxu0 %v4395_v63  ;;  %v4401_v58 = vpack.c.bf16 %v6487_v11, %v6486_v27  ;;  %v6506_v23 = vand.u32 4294901760, %v5975_v7  ;;  %v4515_v7 = vmov 0.0|0.0  }
 0x118   :  { %4388 = vmatprep.subr.bf16.mxu1 %v5992_v18 }
 0x11a   :  { %4398 = vmatpush3.bf16.msra.mxu0 %v4397_v19 }
 0x11b   :  { %4390 = vmatpush3.bf16.msra.mxu1 %v6015_v9  ;;  %4400 = vmatprep.subr.bf16.mxu0 %v4399_v34 }
 0x11c   :  { %4424 = vmatprep.subr.bf16.mxu1 %v5648_v53  ;;  %v6494_v53 = vand.u32 4294901760, %v5818_v10  ;;  %v6500_v10 = vand.u32 4294901760, %v5907_v41  ;;  %v116_v41 = vld [vmem:[%s6192_s1 + $0x308] sm:$0xff] }
 0x11d   :  { %v2711_v63 = vand.u32 4294901760, %v116_v41 }
 0x11e   :  { %2430 = vmatmul.mubr.f32.vlgmr.msra.gmra.mrb[14].mxu1 %v1949_v12  ;;  %4402 = vmatpush3.bf16.msra.mxu0 %v4401_v58  ;;  %v4409_v8 = vpack.c.bf16 %v6495_v51, %v6494_v53  ;;  %v4411_v12 = vpack.c.bf16 %v6497_v52, %v6496_v5 }
 0x11f   :  { %4426 = vmatpush3.bf16.msra.mxu1 %v6464_v17  ;;  %4404 = vmatprep.subr.bf16.mxu0 %v4403_v40  ;;  %v6499_v17 = vand.u32 4294901760, %v5878_v16  ;;  %v115_v16 = vld [vmem:[%s6192_s1 + $0x300] sm:$0xff]  ;;  %s3181_s1 = sshll.u32 %s4518_s0, 4  ;;  %s3182_s1 = int_to_ptr.vmem [resolvable:$true] %s3181_s1 }
 0x120   :  { %4428 = vmatprep.subr.bf16.mxu1 %v6465_v31  ;;  %2700 = vmatprep.mubr.f32.mxu1 %v6483_v57  ;;  %v2708_v20 = vand.u32 4294901760, %v115_v16  ;;  %s4491_s23 = scalar_lea.vmem %s3182_s1, 128  ;;  %p4496_p1 = scmp.lt.s32.totalorder %s3182_s1, %s3182_s1 }
 0x121   :  { %v4413_v31 = vpack.c.bf16 %v6499_v17, %v6498_v26  ;;  %p4492_p0 = scmp.ne.s32.totalorder %s3182_s1, %s4491_s23  ;;  %p4497_p2 = scmp.lt.s32.totalorder %s4491_s23, %s4491_s23 }
 0x122   :  { %4406 = vmatpush3.bf16.msra.mxu0 %v4405_v24  ;;  %v2786_v19 = vsub.f32 %v115_v16, %v2708_v20 }
 0x123   :  { %4430 = vmatpush3.bf16.msra.mxu1 %v6467_v37  ;;  %4408 = vmatprep.subr.bf16.mxu0 %v4407_v33  ;;  %v4415_v37 = vpack.c.bf16 %v6501_v25, %v6500_v10  ;;  %p4498_p3 = por %p4497_p2, %p4496_p1 }
 0x124   :  { %4432 = vmatprep.subr.bf16.mxu1 %v6470_v46  ;;  %v2787_v57 = vand.u32 4294901760, %v2786_v19 }
 0x125   :  { %p4499_p4 = pnand %p4498_p3, %p4492_p0 }
 0x126   :  { %4410 = vmatpush3.bf16.msra.mxu0 %v4409_v8  ;;  %v2788_v27 = vsub.f32 %v2786_v19, %v2787_v57 }
 0x127   :  { %4434 = vmatpush3.bf16.msra.mxu1 %v6471_v45  ;;  %4412 = vmatprep.subr.bf16.mxu0 %v4411_v12  ;;  %v6503_v45 = vand.u32 4294901760, %v5949_v1  ;;  %v6507_v1 = vand.u32 4294901760, %v5978_v47 }
 0x128   :  { %v3291_v42 = vpop.f32.mrb[2].mxu0  ;;  %4436 = vmatprep.subr.bf16.mxu1 %v6472_v50  ;;  %v6504_v50 = vand.u32 4294901760, %v5955_v29  ;;  %v2775_v29 = vsub.f32 %v119_v48, %v2774_v35 }
 0x129   :  { %v3292_v21 = vpop.f32.mrb[3].mxu0  ;;  %v4417_v30 = vpack.c.bf16 %v6503_v45, %v6502_v62  ;;  %v4421_v13 = vpack.c.bf16 %v6507_v1, %v6506_v23 }
 0x12a   :  { %v3293_v46 = vadd.f32 %v3292_v21, %v3291_v42  ;;  %4414 = vmatpush3.bf16.msra.mxu0 %v4413_v31  ;;  %v4419_v56 = vpack.c.bf16 %v6505_v4, %v6504_v50 }
 0x12b   :  { %4438 = vmatpush3.bf16.msra.mxu1 %v6473_v28  ;;  %4416 = vmatprep.subr.bf16.mxu0 %v4415_v37  ;;  %v2793_v28 = vsub.f32 %v116_v41, %v2711_v63 }
 0x12c   :  { %v600_v2 = vadd.f32 %v3293_v46, %v462_v6  ;;  %4440 = vmatprep.subr.bf16.mxu1 %v6474_v43  ;;  %v4456_v43 = vpack.c.bf16 %v2711_v63, %v2708_v20 }
 0x12d   :  { %v2794_v39 = vand.u32 4294901760, %v2793_v28 }
 0x12e   :  { %4418 = vmatpush3.bf16.msra.mxu0 %v4417_v30 }
 0x12f   :  { %4442 = vmatpush3.bf16.msra.mxu1 %v5828_v54  ;;  %4420 = vmatprep.subr.bf16.mxu0 %v4419_v56  ;;  %v2776_v54 = vand.u32 4294901760, %v2775_v29  ;;  %v4468_v34 = vpack.c.bf16 %v2794_v39, %v2787_v57  ;;  %v2795_v11 = vsub.f32 %v2793_v28, %v2794_v39 }
 0x130   :  { %4444 = vmatprep.subr.bf16.mxu1 %v5848_v55  ;;  %v4517_v55 = vmov 0.0  }
 0x131   :  { %v3326_v15 = vpop.f32.mrb[2].mxu1  ;;  %v2796_v58 = vand.u32 4294901760, %v2795_v11 }
 0x132   :  { %v3327_v6 = vpop.f32.mrb[3].mxu1  ;;  %4422 = vmatpush3.bf16.msra.mxu0 %v4421_v13 }
 0x133   :  { %v3328_v61 = vadd.f32 %v3327_v6, %v3326_v15  ;;  %4446 = vmatpush3.bf16.msra.mxu1 %v5868_v36  ;;  %4464 = vmatprep.subr.bf16.mxu0 %v4515_v7  ;;  %v2789_v36 = vand.u32 4294901760, %v2788_v27 }
 0x134   :  { %4448 = vmatprep.subr.bf16.mxu1 %v5905_v60  ;;  %v2777_v60 = vsub.f32 %v2775_v29, %v2776_v54 }
 0x135   :  { %v708_v47 = vadd.f32 %v3328_v61, %v600_v2  ;;  %2598 = vmatmul.mubr.f32.vlgmr.msra.gmra.mrb[16].mxu0 %v5932_v44 }
 0x136   :  { %4466 = vmatpush3.bf16.msra.mxu0 %v4456_v43  ;;  %3862 = vmatprep.mubr.msk.f32.mxu0 %vm4516_vm1, %v4517_v55  ;;  %v2778_v3 = vand.u32 4294901760, %v2777_v60 }
 0x137   :  { %4450 = vmatpush3.bf16.msra.mxu1 %v5990_v0  ;;  %4467 = vmatprep.subr.bf16.mxu0 %v4515_v7  ;;  %v4459_v0 = vpack.c.bf16 %v2796_v58, %v2789_v36 }
 0x138   :  { %4452 = vmatprep.subr.bf16.mxu1 %v5992_v18  ;;  %v4462_v18 = vpack.c.bf16 %v2793_v28, %v2786_v19 }
 0x139   :  { %3863 = vmatmul.mubr.f32.vlgmr.msra.gmra.mrb[18].mxu0 %v2776_v54 }
 0x13a   :  { %4469 = vmatpush3.bf16.msra.mxu0 %v4468_v34  ;;  %3869 = vmatprep.mubr.msk.f32.mxu0 %vm4516_vm1, %v4517_v55 }
 0x13b   :  { %4454 = vmatpush3.bf16.msra.mxu1 %v6015_v9  ;;  %4470 = vmatprep.subr.bf16.mxu0 %v4515_v7 }
 0x13c   :  { %4455 = vmatprep.subr.bf16.mxu1 %v4515_v7 }
 0x13e   :  { %2702 = vmatmul.mubr.f32.vlgmr.msra.gmra.mrb[16].mxu1 %v5932_v44 }
 0x13f   :  { %4457 = vmatpush3.bf16.msra.mxu1 %v4456_v43  ;;  %3841 = vmatprep.mubr.msk.f32.mxu1 %vm4516_vm1, %v4517_v55 }
 0x140   :  { %4458 = vmatprep.subr.bf16.mxu1 %v4515_v7 }
 0x141   :  { %3870 = vmatmul.mubr.f32.vlgmr.msra.gmra.mrb[18].mxu0 %v2774_v35 }
 0x142   :  { %3842 = vmatmul.mubr.f32.vlgmr.msra.gmra.mrb[18].mxu1 %v2778_v3  ;;  %4472 = vmatpush3.bf16.msra.mxu0 %v4456_v43 }
 0x143   :  { %4460 = vmatpush3.bf16.msra.mxu1 %v4459_v0  ;;  %3848 = vmatprep.mubr.msk.f32.mxu1 %vm4516_vm1, %v4517_v55 }
 0x144   :  { %3876 = vmatprep.mubr.msk.f32.mxu0 %vm4516_vm1, %v4517_v55  ;;  %4461 = vmatprep.subr.bf16.mxu1 %v4515_v7 }
 0x148   :  { %v3361_v9 = vpop.f32.mrb[4].mxu0 }
 0x149   :  { %v3362_v22 = vpop.f32.mrb[5].mxu0  ;;  %3877 = vmatmul.mubr.f32.vlgmr.msra.gmra.mrb[18].mxu0 %v2774_v35 }
 0x14a   :  { %v3363_v44 = vadd.f32 %v3362_v22, %v3361_v9  ;;  %3849 = vmatmul.mubr.f32.vlgmr.msra.gmra.mrb[18].mxu1 %v2774_v35 }
 0x14b   :  { %4463 = vmatpush3.bf16.msra.mxu1 %v4462_v18  ;;  %3855 = vmatprep.mubr.msk.f32.mxu1 %vm4516_vm1, %v4517_v55 }
 0x14c   :  { %v876_v40 = vadd.f32 %v3363_v44, %v708_v47 }
 0x151   :  { %v3396_v32 = vpop.f32.mrb[4].mxu1 }
 0x152   :  { %v3397_v49 = vpop.f32.mrb[5].mxu1  ;;  %3856 = vmatmul.mubr.f32.vlgmr.msra.gmra.mrb[18].mxu1 %v2775_v29 }
 0x153   :  { %v3398_v24 = vadd.f32 %v3397_v49, %v3396_v32 }
 0x155   :  { %v980_v38 = vadd.f32 %v3398_v24, %v876_v40 }
 0x168   :  { %v3431_v14 = vpop.f32.mrb[6].mxu0 }
 0x169   :  { %v3432_v33 = vpop.f32.mrb[7].mxu0 }
 0x16a   :  { %v3433_v53 = vadd.f32 %v3432_v33, %v3431_v14 }
 0x16c   :  { %v1092_v51 = vadd.f32 %v3433_v53, %v980_v38 }
 0x171   :  { %v3466_v8 = vpop.f32.mrb[6].mxu1 }
 0x172   :  { %v3467_v5 = vpop.f32.mrb[7].mxu1 }
 0x173   :  { %v3468_v52 = vadd.f32 %v3467_v5, %v3466_v8 }
 0x175   :  { %v1324_v12 = vadd.f32 %v3468_v52, %v1092_v51 }
 0x188   :  { %v3501_v26 = vpop.f32.mrb[8].mxu0 }
 0x189   :  { %v3502_v17 = vpop.f32.mrb[9].mxu0 }
 0x18a   :  { %v3503_v31 = vadd.f32 %v3502_v17, %v3501_v26 }
 0x18c   :  { %v1462_v10 = vadd.f32 %v3503_v31, %v1324_v12 }
 0x191   :  { %v3536_v25 = vpop.f32.mrb[8].mxu1 }
 0x192   :  { %v3537_v37 = vpop.f32.mrb[9].mxu1 }
 0x193   :  { %v3538_v59 = vadd.f32 %v3537_v37, %v3536_v25 }
 0x195   :  { %v1570_v42 = vadd.f32 %v3538_v59, %v1462_v10 }
 0x1a8   :  { %v3571_v21 = vpop.f32.mrb[10].mxu0 }
 0x1a9   :  { %v3572_v16 = vpop.f32.mrb[11].mxu0 }
 0x1aa   :  { %v3573_v41 = vadd.f32 %v3572_v16, %v3571_v21 }
 0x1ac   :  { %v1738_v46 = vadd.f32 %v3573_v41, %v1570_v42 }
 0x1b1   :  { %v3606_v62 = vpop.f32.mrb[10].mxu1 }
 0x1b2   :  { %v3607_v45 = vpop.f32.mrb[11].mxu1 }
 0x1b3   :  { %v3608_v30 = vadd.f32 %v3607_v45, %v3606_v62 }
 0x1b5   :  { %v1842_v48 = vadd.f32 %v3608_v30, %v1738_v46 }
 0x1c8   :  { %v3641_v50 = vpop.f32.mrb[12].mxu0 }
 0x1c9   :  { %v3642_v4 = vpop.f32.mrb[13].mxu0 }
 0x1ca   :  { %v3643_v56 = vadd.f32 %v3642_v4, %v3641_v50 }
 0x1cc   :  { %v1954_v2 = vadd.f32 %v3643_v56, %v1842_v48 }
 0x1d1   :  { %v3676_v20 = vpop.f32.mrb[12].mxu1 }
 0x1d2   :  { %v3677_v63 = vpop.f32.mrb[13].mxu1 }
 0x1d3   :  { %v3678_v35 = vadd.f32 %v3677_v63, %v3676_v20 }
 0x1d5   :  { %v2186_v23 = vadd.f32 %v3678_v35, %v1954_v2 }
 0x1e8   :  { %v3711_v1 = vpop.f32.mrb[14].mxu0 }
 0x1e9   :  { %v3712_v13 = vpop.f32.mrb[15].mxu0 }
 0x1ea   :  { %v3713_v19 = vadd.f32 %v3712_v13, %v3711_v1 }
 0x1ec   :  { %v2324_v28 = vadd.f32 %v3713_v19, %v2186_v23 }
 0x1f1   :  { %v3746_v15 = vpop.f32.mrb[14].mxu1 }
 0x1f2   :  { %v3747_v29 = vpop.f32.mrb[15].mxu1 }
 0x1f3   :  { %v3748_v6 = vadd.f32 %v3747_v29, %v3746_v15 }
 0x1f5   :  { %v2432_v43 = vadd.f32 %v3748_v6, %v2324_v28 }
 0x208   :  { %v3781_v57 = vpop.f32.mrb[16].mxu0 }
 0x209   :  { %v3782_v39 = vpop.f32.mrb[17].mxu0 }
 0x20a   :  { %v3783_v61 = vadd.f32 %v3782_v39, %v3781_v57 }
 0x20c   :  { %v2600_v7 = vadd.f32 %v3783_v61, %v2432_v43 }
 0x211   :  { %v3816_v47 = vpop.f32.mrb[16].mxu1 }
 0x212   :  { %v3817_v54 = vpop.f32.mrb[17].mxu1 }
 0x213   :  { %v3818_v55 = vadd.f32 %v3817_v54, %v3816_v47 }
 0x215   :  { %v2704_v34 = vadd.f32 %v3818_v55, %v2600_v7 }
 0x21c   :  { %v3162_v27 = vpop.f32.mrb[18].mxu0 }
 0x21d   :  { %v3878_v11 = vpop.f32.mrb[19].mxu0 }
 0x225   :  { %v2937_v60 = vpop.f32.mrb[18].mxu1 }
 0x226   :  { %v4473_v36 = vadd.f32 %v2937_v60, %v2704_v34  ;;  %v3857_v58 = vpop.f32.mrb[19].mxu1 }
 0x228   :  { %v4474_v3 = vadd.f32 %v4473_v36, %v3162_v27 }
 0x22a   :  { %v3166_v0 = vmul.f32 1.442695, %v4474_v3 }
 0x22c   :  { %4487 = vpow2.f32 %v3166_v0 }
 0x236   :  { %v4488_v18 = vpop.eup %4487 }
 0x237   :  { %v3169_v9 = vsel %vm3168_vm2, %v4488_v18, 0.0 }
 0x238   :  { %3170 = vadd.xlane.f32.xlu0 %v3169_v9 }
 0x2c5   :  { %v3171_v22 = vpop.xlane.xlu0 %3170 }
 0x2c6   :  { %4489 = vrcp.f32 %v3171_v22 }
 0x2d0   :  { %v4490_v44 = vpop.eup %4489 }
 0x2d1   :  { %v3173_v40 = vmul.f32 %v4490_v44, %v4488_v18 }
 0x2d3   :  { %3174 = vst.msk [vmem:[#allocation2] sm:$0xff] %vm3168_vm2, %v3173_v40 }
 0x2d4   :  { %4502 = shalt.err (!%p4499_p4)
}
 0x2d5   :  { %s4503_s26 = scalar_lea.hbm %s6193_s2, 128 }
 0x2d6   :  { %p4504_p5 = scmp.ne.s32.totalorder %s6193_s2, %s4503_s26  ;;  %p4507_p6 = scmp.lt.u32.totalorder %s4503_s26, %s6193_s2 }
 0x2d8   :  { %p4509_p7 = pnand %p4507_p6, %p4504_p5 }
 0x2da   :  { %4512 = shalt.err (!%p4509_p7)
}
 0x2db   :  { %3184 = dma.vmem_to_hbm [thread:$0]  %s3182_s1, 128, %s6193_s2, [#allocation3]  }
 0x2dc   :  { %4513 = dma.done.wait [#allocation3], 128  }
 0x2dd   :  { %4514 = vsyncadd [#allocation3], 4294967168 }
 0x2de   :  { %3188 = vsyncpa [#allocation3], 1 }

</bundles_post_ra>
